<compile_context>
chip_gen: v5e
topology: v5e:2x2
jax: 0.10.0
libtpu: 0.0.40
codegen_flags: <defaults>
</compile_context>

<pallas_src>
import functools
import math

import numpy as np
import jax
import jax.numpy as jnp
from jax import lax
from jax.experimental import pallas as pl
from jax.experimental.pallas import tpu as pltpu

# ConvModel hyper-parameters (defaults from the PyTorch module).
K1, K2 = 7, 3
C_IN, C1, C2, NUM_CLASSES = 1, 10, 20, 10


def conv_model_kernel(xim_ref, a1_ref, b1_ref, a2_ref, b2_ref, s_ref, wc_ref, bf_ref,
                      o_ref, *, H, W, Bt):
    """Forward pass for one batch block of Bt images stacked along rows."""
    R2 = Bt * H                      # conv2 output rows (valid rows: r % H < H2)

    xim = xim_ref[0]                 # (R1p, K1*W) bf16 row-im2col slab

    # ---- Conv2d(1, C1, K1) + bias + ReLU: one K = K1*W banded contraction ------
    acc1 = jnp.dot(xim, a1_ref[...], preferred_element_type=jnp.float32)
    h1 = jnp.maximum(acc1 + b1_ref[...], 0.0).astype(jnp.bfloat16)   # (R1p, W1*C1)

    # ---- Conv2d(C1, C2, K2) + bias + ReLU: K2 row-shifted banded matmuls -------
    acc2 = jnp.dot(h1[0:R2, :], a2_ref[0], preferred_element_type=jnp.float32)
    for kh in range(1, K2):
        acc2 = acc2 + jnp.dot(h1[kh:kh + R2, :], a2_ref[kh],
                              preferred_element_type=jnp.float32)
    h2 = jnp.maximum(acc2 + b2_ref[...], 0.0).astype(jnp.bfloat16)   # (R2, W2*C2)

    # ---- AdaptiveAvgPool2d(1) + Linear(C2, NC), fused & reordered ---------------
    # wc folds the per-column sum, the 1/(H2*W2) mean and the classifier weight, so
    # the narrow (NC-wide) per-row logits are computed first; S then selects & sums
    # each image's valid rows (masking batch padding and the garbage rows whose conv
    # windows straddle image boundaries).
    row_logits = jnp.dot(h2, wc_ref[...], preferred_element_type=jnp.float32)   # (R2, NC)
    logits = jnp.dot(s_ref[...], row_logits.astype(jnp.bfloat16),
                     preferred_element_type=jnp.float32) + bf_ref[...]          # (Bt, NC)
    o_ref[...] = logits


def _banded_conv1_weights(w1, W):
    """(C1, 1, K1, K1) -> (K1*W, W1*C1): A1[kh*W+w, j*C1+c] = w1[c,0,kh,w-j] (band)."""
    W1 = W - K1 + 1
    w = jnp.arange(W)[:, None]
    j = jnp.arange(W1)[None, :]
    diff = w - j                                        # (W, W1)
    valid = (diff >= 0) & (diff < K1)
    kw = jnp.clip(diff, 0, K1 - 1)
    core = w1[:, 0, :, :]                               # (C1, K1, K1) [c, kh, kw]
    g = core[:, :, kw]                                  # (C1, K1, W, W1)
    g = jnp.where(valid[None, None, :, :], g, 0.0)
    a1 = jnp.transpose(g, (1, 2, 3, 0))                 # (K1, W, W1, C1)
    return a1.reshape(K1 * W, W1 * C1)


def _banded_conv2_weights(w2, W1):
    """(C2, C1, K2, K2) -> (K2, W1*C1, W2*C2): A2[kh, wi*C1+ci, j*C2+co]=w2[co,ci,kh,wi-j]."""
    W2 = W1 - K2 + 1
    wi = jnp.arange(W1)[:, None]
    j = jnp.arange(W2)[None, :]
    diff = wi - j                                       # (W1, W2)
    valid = (diff >= 0) & (diff < K2)
    kw = jnp.clip(diff, 0, K2 - 1)
    g = w2[:, :, :, kw]                                 # (C2, C1, K2, W1, W2)
    g = jnp.where(valid[None, None, None, :, :], g, 0.0)
    a2 = jnp.transpose(g, (2, 3, 1, 4, 0))              # (K2, W1, C1, W2, C2)
    return a2.reshape(K2, W1 * C1, W2 * C2)


@functools.partial(jax.jit, static_argnames=("block_b",))
def conv_model_forward(x_nchw, params, *, block_b=64):
    """x_nchw: (B, 1, H, W) float32.  Returns (B, NUM_CLASSES) (or (NUM_CLASSES,) if B==1)."""
    w1, b1, w2, b2, wf, bf = params
    B, cin, H, W = x_nchw.shape
    assert cin == C_IN
    H1, W1 = H - K1 + 1, W - K1 + 1
    H2, W2 = H1 - K2 + 1, W1 - K2 + 1
    assert H2 > 0 and W2 > 0, "input too small for the two valid convolutions"

    Bt = min(block_b, B)
    nblk = -(-B // Bt)
    B_pad = nblk * Bt
    # keeps the output block (Bt, NUM_CLASSES) legal: divisible by 8 or == full dim
    assert Bt == B_pad or Bt % 8 == 0, "block_b must be a multiple of 8 when B > block_b"

    R2 = Bt * H                           # conv2 output rows per block
    pad_rows = -(-(K2 - 1) // 8) * 8      # sublane-aligned lookahead for conv2
    R1p = R2 + pad_rows                   # conv1 output rows computed per block

    # ---- row-im2col of the stacked input (all under jit: pad/slice/concat/cast) ---
    # xim[blk, r, kh*W + w] = x_slab[blk, r + kh, w]; garbage rows (cross-image
    # windows, zero-padding) are masked later by the S row-selection matrix.
    x = x_nchw[:, 0, :, :]
    if B_pad != B:
        x = jnp.pad(x, ((0, B_pad - B), (0, 0), (0, 0)))
    x = x.reshape(nblk, R2, W)
    x = jnp.pad(x, ((0, 0), (0, pad_rows + K1 - 1), (0, 0)))      # (nblk, R1p+K1-1, W)
    xim = jnp.concatenate([x[:, kh:kh + R1p, :] for kh in range(K1)], axis=-1)
    xim = xim.astype(jnp.bfloat16)                                # (nblk, R1p, K1*W)

    # ---- weights (host/XLA-side prep; tiny) ----------------------------------------
    a1 = _banded_conv1_weights(w1, W).astype(jnp.bfloat16)        # (K1*W, W1*C1)
    b1r = jnp.tile(b1, W1)[None, :].astype(jnp.float32)           # (1, W1*C1)
    a2 = _banded_conv2_weights(w2, W1).astype(jnp.bfloat16)       # (K2, W1*C1, W2*C2)
    b2r = jnp.tile(b2, W2)[None, :].astype(jnp.float32)           # (1, W2*C2)

    r = jnp.arange(R2)
    s_mat = (((r[None, :] // H) == jnp.arange(Bt)[:, None])
             & ((r[None, :] % H) < H2)).astype(jnp.bfloat16)      # (Bt, R2), exact 0/1
    wc = (jnp.tile(wf.T, (W2, 1)) / float(H2 * W2)).astype(jnp.bfloat16)  # (W2*C2, NC)
    bfr = bf[None, :].astype(jnp.float32)                         # (1, NUM_CLASSES)

    flops = nblk * (2 * R1p * (K1 * W) * (W1 * C1)                # conv1
                    + K2 * 2 * R2 * (W1 * C1) * (W2 * C2)         # conv2
                    + 2 * R2 * (W2 * C2) * NUM_CLASSES            # per-row classifier
                    + 2 * Bt * R2 * NUM_CLASSES)                  # row-selection pool
    bytes_accessed = (xim.size * 2 + a1.size * 2 + a2.size * 2
                      + (b1r.size + b2r.size + bfr.size) * 4
                      + s_mat.size * 2 + wc.size * 2
                      + B_pad * NUM_CLASSES * 4)

    kernel = functools.partial(conv_model_kernel, H=H, W=W, Bt=Bt)
    out = pl.pallas_call(
        kernel,
        out_shape=jax.ShapeDtypeStruct((B_pad, NUM_CLASSES), jnp.float32),
        grid_spec=pltpu.PrefetchScalarGridSpec(
            num_scalar_prefetch=0,
            grid=(nblk,),
            in_specs=[
                pl.BlockSpec((1, R1p, K1 * W), lambda b: (b, 0, 0)),
                pl.BlockSpec(a1.shape, lambda b: (0, 0)),
                pl.BlockSpec(b1r.shape, lambda b: (0, 0)),
                pl.BlockSpec(a2.shape, lambda b: (0, 0, 0)),
                pl.BlockSpec(b2r.shape, lambda b: (0, 0)),
                pl.BlockSpec(s_mat.shape, lambda b: (0, 0)),
                pl.BlockSpec(wc.shape, lambda b: (0, 0)),
                pl.BlockSpec(bfr.shape, lambda b: (0, 0)),
            ],
            out_specs=pl.BlockSpec((Bt, NUM_CLASSES), lambda b: (b, 0)),
        ),
        compiler_params=pltpu.CompilerParams(dimension_semantics=("parallel",)),
        cost_estimate=pl.CostEstimate(flops=flops, transcendentals=0,
                                      bytes_accessed=bytes_accessed),
    )(xim, a1, b1r, a2, b2r, s_mat, wc, bfr)

    out = out[:B]
    if B == 1:
        out = out[0]          # mirror torch .squeeze() semantics for batch size 1
    return out


def reference_forward(x_nchw, params):
    """Pure-JAX f32 reference matching the PyTorch forward (correctness check)."""
    w1, b1, w2, b2, wf, bf = params
    dn = ("NCHW", "OIHW", "NCHW")
    y = lax.conv_general_dilated(x_nchw, w1, (1, 1), "VALID", dimension_numbers=dn)
    y = jnp.maximum(y + b1[None, :, None, None], 0.0)
    y = lax.conv_general_dilated(y, w2, (1, 1), "VALID", dimension_numbers=dn)
    y = jnp.maximum(y + b2[None, :, None, None], 0.0)
    y = jnp.mean(y, axis=(2, 3))                       # AdaptiveAvgPool2d(1) + squeeze
    return y @ wf.T + bf


if __name__ == "__main__":
    B, H, W = 12, 16, 16      # small batch: whole batch processed in one grid step
    key = jax.random.PRNGKey(0)
    kx, ka, kb, kc, kd, ke, kf = jax.random.split(key, 7)

    def uniform_init(k, shape, fan_in):
        bound = 1.0 / math.sqrt(fan_in)
        return jax.random.uniform(k, shape, jnp.float32, -bound, bound)

    w1 = uniform_init(ka, (C1, C_IN, K1, K1), C_IN * K1 * K1)
    b1 = uniform_init(kb, (C1,), C_IN * K1 * K1)
    w2 = uniform_init(kc, (C2, C1, K2, K2), C1 * K2 * K2)
    b2 = uniform_init(kd, (C2,), C1 * K2 * K2)
    wf = uniform_init(ke, (NUM_CLASSES, C2), C2)
    bf = uniform_init(kf, (NUM_CLASSES,), C2)
    params = (w1, b1, w2, b2, wf, bf)

    x = jax.random.normal(kx, (B, C_IN, H, W), jnp.float32)

    out = conv_model_forward(x, params, block_b=64)
    out = jax.block_until_ready(out)
    assert out.shape == (B, NUM_CLASSES)

    ref = reference_forward(x, params)
    # Kernel uses bf16 operands with f32 MXU accumulation, so compare against the
    # f32 reference with bf16-appropriate tolerances.
    np.testing.assert_allclose(np.asarray(out), np.asarray(ref), rtol=5e-2, atol=5e-2)
    print("KERNEL_OK")
</pallas_src>

<mosaic_0001>
module attributes {stable_mosaic.version = 11 : i64} {
  func.func @conv_model_kernel(%arg0: i32, %arg1: memref<1x200x112xbf16, #tpu.memory_space<vmem>>, %arg2: memref<112x100xbf16, #tpu.memory_space<vmem>>, %arg3: memref<1x100xf32, #tpu.memory_space<vmem>>, %arg4: memref<3x100x160xbf16, #tpu.memory_space<vmem>>, %arg5: memref<1x160xf32, #tpu.memory_space<vmem>>, %arg6: memref<12x192xbf16, #tpu.memory_space<vmem>>, %arg7: memref<160x10xbf16, #tpu.memory_space<vmem>>, %arg8: memref<1x10xf32, #tpu.memory_space<vmem>>, %arg9: memref<12x10xf32, #tpu.memory_space<vmem>>) attributes {dimension_semantics = [#tpu.dimension_semantics<parallel>], iteration_bounds = array<i64: 1>, scalar_prefetch = 0 : i64, scratch_operands = 0 : i64, tpu.core_type = #tpu.core_type<tc>, window_params = [{transform_indices = @transform_0, window_bounds = array<i64: 1, 200, 112>}, {pipeline_mode = #tpu.pipeline_mode<synchronous>, transform_indices = @transform_1, window_bounds = array<i64: 112, 100>}, {pipeline_mode = #tpu.pipeline_mode<synchronous>, transform_indices = @transform_2, window_bounds = array<i64: 1, 100>}, {pipeline_mode = #tpu.pipeline_mode<synchronous>, transform_indices = @transform_3, window_bounds = array<i64: 3, 100, 160>}, {pipeline_mode = #tpu.pipeline_mode<synchronous>, transform_indices = @transform_4, window_bounds = array<i64: 1, 160>}, {pipeline_mode = #tpu.pipeline_mode<synchronous>, transform_indices = @transform_5, window_bounds = array<i64: 12, 192>}, {pipeline_mode = #tpu.pipeline_mode<synchronous>, transform_indices = @transform_6, window_bounds = array<i64: 160, 10>}, {pipeline_mode = #tpu.pipeline_mode<synchronous>, transform_indices = @transform_7, window_bounds = array<i64: 1, 10>}, {transform_indices = @transform_8, window_bounds = array<i64: 12, 10>}]} {
    %c0 = arith.constant 0 : index
    %c0_0 = arith.constant 0 : index
    %c0_1 = arith.constant 0 : index
    %0 = vector.load %arg1[%c0, %c0_0, %c0_1] : memref<1x200x112xbf16, #tpu.memory_space<vmem>>, vector<1x200x112xbf16>
    %1 = vector.shape_cast %0 : vector<1x200x112xbf16> to vector<200x112xbf16>
    %c0_2 = arith.constant 0 : index
    %c0_3 = arith.constant 0 : index
    %2 = vector.load %arg2[%c0_2, %c0_3] : memref<112x100xbf16, #tpu.memory_space<vmem>>, vector<112x100xbf16>
    %cst = arith.constant dense<0.000000e+00> : vector<200x100xf32>
    %3 = tpu.matmul %1, %2, %cst {dimension_numbers = #tpu.dot_dimension_numbers<[1], [0], [0], [1], [0, 0, 1, 1], [], []>} : vector<200x112xbf16>, vector<112x100xbf16>, vector<200x100xf32> -> vector<200x100xf32>
    %c0_4 = arith.constant 0 : index
    %c0_5 = arith.constant 0 : index
    %4 = vector.load %arg3[%c0_4, %c0_5] : memref<1x100xf32, #tpu.memory_space<vmem>>, vector<1x100xf32>
    %5 = vector.broadcast %4 : vector<1x100xf32> to vector<200x100xf32>
    %6 = arith.addf %3, %5 : vector<200x100xf32>
    %cst_6 = arith.constant 0.000000e+00 : f32
    %7 = vector.broadcast %cst_6 : f32 to vector<200x100xf32>
    %8 = arith.maximumf %6, %7 : vector<200x100xf32>
    %9 = arith.truncf %8 : vector<200x100xf32> to vector<200x100xbf16>
    %10 = vector.extract_strided_slice %9 {offsets = [0, 0], sizes = [192, 100], strides = [1, 1]} : vector<200x100xbf16> to vector<192x100xbf16>
    %c0_7 = arith.constant 0 : index
    %c0_8 = arith.constant 0 : index
    %c0_9 = arith.constant 0 : index
    %11 = vector.load %arg4[%c0_7, %c0_8, %c0_9] : memref<3x100x160xbf16, #tpu.memory_space<vmem>>, vector<1x100x160xbf16>
    %12 = vector.shape_cast %11 : vector<1x100x160xbf16> to vector<100x160xbf16>
    %cst_10 = arith.constant dense<0.000000e+00> : vector<192x160xf32>
    %13 = tpu.matmul %10, %12, %cst_10 {dimension_numbers = #tpu.dot_dimension_numbers<[1], [0], [0], [1], [0, 0, 1, 1], [], []>} : vector<192x100xbf16>, vector<100x160xbf16>, vector<192x160xf32> -> vector<192x160xf32>
    %14 = vector.extract_strided_slice %9 {offsets = [1, 0], sizes = [192, 100], strides = [1, 1]} : vector<200x100xbf16> to vector<192x100xbf16>
    %c1 = arith.constant 1 : index
    %c0_11 = arith.constant 0 : index
    %c0_12 = arith.constant 0 : index
    %15 = vector.load %arg4[%c1, %c0_11, %c0_12] : memref<3x100x160xbf16, #tpu.memory_space<vmem>>, vector<1x100x160xbf16>
    %16 = vector.shape_cast %15 : vector<1x100x160xbf16> to vector<100x160xbf16>
    %cst_13 = arith.constant dense<0.000000e+00> : vector<192x160xf32>
    %17 = tpu.matmul %14, %16, %cst_13 {dimension_numbers = #tpu.dot_dimension_numbers<[1], [0], [0], [1], [0, 0, 1, 1], [], []>} : vector<192x100xbf16>, vector<100x160xbf16>, vector<192x160xf32> -> vector<192x160xf32>
    %18 = arith.addf %13, %17 : vector<192x160xf32>
    %19 = vector.extract_strided_slice %9 {offsets = [2, 0], sizes = [192, 100], strides = [1, 1]} : vector<200x100xbf16> to vector<192x100xbf16>
    %c2 = arith.constant 2 : index
    %c0_14 = arith.constant 0 : index
    %c0_15 = arith.constant 0 : index
    %20 = vector.load %arg4[%c2, %c0_14, %c0_15] : memref<3x100x160xbf16, #tpu.memory_space<vmem>>, vector<1x100x160xbf16>
    %21 = vector.shape_cast %20 : vector<1x100x160xbf16> to vector<100x160xbf16>
    %cst_16 = arith.constant dense<0.000000e+00> : vector<192x160xf32>
    %22 = tpu.matmul %19, %21, %cst_16 {dimension_numbers = #tpu.dot_dimension_numbers<[1], [0], [0], [1], [0, 0, 1, 1], [], []>} : vector<192x100xbf16>, vector<100x160xbf16>, vector<192x160xf32> -> vector<192x160xf32>
    %23 = arith.addf %18, %22 : vector<192x160xf32>
    %c0_17 = arith.constant 0 : index
    %c0_18 = arith.constant 0 : index
    %24 = vector.load %arg5[%c0_17, %c0_18] : memref<1x160xf32, #tpu.memory_space<vmem>>, vector<1x160xf32>
    %25 = vector.broadcast %24 : vector<1x160xf32> to vector<192x160xf32>
    %26 = arith.addf %23, %25 : vector<192x160xf32>
    %cst_19 = arith.constant 0.000000e+00 : f32
    %27 = vector.broadcast %cst_19 : f32 to vector<192x160xf32>
    %28 = arith.maximumf %26, %27 : vector<192x160xf32>
    %29 = arith.truncf %28 : vector<192x160xf32> to vector<192x160xbf16>
    %c0_20 = arith.constant 0 : index
    %c0_21 = arith.constant 0 : index
    %30 = vector.load %arg7[%c0_20, %c0_21] : memref<160x10xbf16, #tpu.memory_space<vmem>>, vector<160x10xbf16>
    %cst_22 = arith.constant dense<0.000000e+00> : vector<192x10xf32>
    %31 = tpu.matmul %29, %30, %cst_22 {dimension_numbers = #tpu.dot_dimension_numbers<[1], [0], [0], [1], [0, 0, 1, 1], [], []>} : vector<192x160xbf16>, vector<160x10xbf16>, vector<192x10xf32> -> vector<192x10xf32>
    %c0_23 = arith.constant 0 : index
    %c0_24 = arith.constant 0 : index
    %32 = vector.load %arg6[%c0_23, %c0_24] : memref<12x192xbf16, #tpu.memory_space<vmem>>, vector<12x192xbf16>
    %33 = arith.truncf %31 : vector<192x10xf32> to vector<192x10xbf16>
    %cst_25 = arith.constant dense<0.000000e+00> : vector<12x10xf32>
    %34 = tpu.matmul %32, %33, %cst_25 {dimension_numbers = #tpu.dot_dimension_numbers<[1], [0], [0], [1], [0, 0, 1, 1], [], []>} : vector<12x192xbf16>, vector<192x10xbf16>, vector<12x10xf32> -> vector<12x10xf32>
    %c0_26 = arith.constant 0 : index
    %c0_27 = arith.constant 0 : index
    %35 = vector.load %arg8[%c0_26, %c0_27] : memref<1x10xf32, #tpu.memory_space<vmem>>, vector<1x10xf32>
    %36 = vector.broadcast %35 : vector<1x10xf32> to vector<12x10xf32>
    %37 = arith.addf %34, %36 : vector<12x10xf32>
    %c0_28 = arith.constant 0 : index
    %c0_29 = arith.constant 0 : index
    %38 = vector.load %arg9[%c0_28, %c0_29] : memref<12x10xf32, #tpu.memory_space<vmem>>, vector<12x10xf32>
    tpu.vector_store %arg9[%c0_28, %c0_29], %37 {strides = array<i32>} : memref<12x10xf32, #tpu.memory_space<vmem>>, vector<12x10xf32>,
    return
  }
  func.func @transform_0(%arg0: i32) -> (i32, i32, i32) {
    %c0_i32 = arith.constant 0 : i32
    %c0_i32_0 = arith.constant 0 : i32
    %c0_i32_1 = arith.constant 0 : i32
    return %arg0, %c0_i32, %c0_i32_0 : i32, i32, i32
  }
  func.func @transform_1(%arg0: i32) -> (i32, i32) {
    %c0_i32 = arith.constant 0 : i32
    %c0_i32_0 = arith.constant 0 : i32
    %c0_i32_1 = arith.constant 0 : i32
    return %c0_i32, %c0_i32_0 : i32, i32
  }
  func.func @transform_2(%arg0: i32) -> (i32, i32) {
    %c0_i32 = arith.constant 0 : i32
    %c0_i32_0 = arith.constant 0 : i32
    %c0_i32_1 = arith.constant 0 : i32
    return %c0_i32, %c0_i32_0 : i32, i32
  }
  func.func @transform_3(%arg0: i32) -> (i32, i32, i32) {
    %c0_i32 = arith.constant 0 : i32
    %c0_i32_0 = arith.constant 0 : i32
    %c0_i32_1 = arith.constant 0 : i32
    %c0_i32_2 = arith.constant 0 : i32
    return %c0_i32, %c0_i32_0, %c0_i32_1 : i32, i32, i32
  }
  func.func @transform_4(%arg0: i32) -> (i32, i32) {
    %c0_i32 = arith.constant 0 : i32
    %c0_i32_0 = arith.constant 0 : i32
    %c0_i32_1 = arith.constant 0 : i32
    return %c0_i32, %c0_i32_0 : i32, i32
  }
  func.func @transform_5(%arg0: i32) -> (i32, i32) {
    %c0_i32 = arith.constant 0 : i32
    %c0_i32_0 = arith.constant 0 : i32
    %c0_i32_1 = arith.constant 0 : i32
    return %c0_i32, %c0_i32_0 : i32, i32
  }
  func.func @transform_6(%arg0: i32) -> (i32, i32) {
    %c0_i32 = arith.constant 0 : i32
    %c0_i32_0 = arith.constant 0 : i32
    %c0_i32_1 = arith.constant 0 : i32
    return %c0_i32, %c0_i32_0 : i32, i32
  }
  func.func @transform_7(%arg0: i32) -> (i32, i32) {
    %c0_i32 = arith.constant 0 : i32
    %c0_i32_0 = arith.constant 0 : i32
    %c0_i32_1 = arith.constant 0 : i32
    return %c0_i32, %c0_i32_0 : i32, i32
  }
  func.func @transform_8(%arg0: i32) -> (i32, i32) {
    %c0_i32 = arith.constant 0 : i32
    %c0_i32_0 = arith.constant 0 : i32
    return %arg0, %c0_i32 : i32, i32
  }
}

</mosaic_0001>

<bundles_post_ra>
// kernel: tile.18
= control target key start
LH: loop header
LB: loop body
LE: loop exit
PB: predicated region body
PF: predicated region fallthrough
CT: control target
= control target key end

     0   :  { %s28_s0 = inlined_call_operand.vmem [shape: f32[10], index: 0, kind: input, shape index: {}]   ;;  %s29_s1 = inlined_call_operand.vmem [shape: f32[10,10], index: 1, kind: output, shape index: {}]  }
   0x1   :  { %v4_v0 = vld [vmem:[%s28_s0] ss:$0 sm:$0xff] }
   0x2   :  { %5 = vst [vmem:[%s29_s1] sm:$0xff] %v4_v0 }
   0x3   :  { %8 = vst [vmem:[%s29_s1 + $0x8] sm:$0xff] %v4_v0 }

// kernel: tile.19
= control target key start
LH: loop header
LB: loop body
LE: loop exit
PB: predicated region body
PF: predicated region fallthrough
CT: control target
= control target key end

     0   :  { %s83_s10 = smov 90   ;;  %s84_s11 = smov 70   ;;  %vm3_vm0 = vcmask 80896   ;;  %vm9_vm1 = vcmask 818896   ;;  %vm15_vm2 = vcmask 736896   ;;  %vm21_vm3 = vcmask 654896   ;;  %s135_s0 = inlined_call_operand.vmem [shape: f32[10,10], index: 0, kind: input, shape index: {}]   ;;  %s136_s1 = inlined_call_operand.vmem [shape: f32[1,100], index: 1, kind: output, shape index: {}]  }
   0x1   :  { %v65_v0 = vld [vmem:[%s135_s0 + $0x9] sm:$0x1]   ;;  %v67_v1 = vld [vmem:[%s135_s0 + $0x7] sm:$0x1]   ;;  %v69_v2 = vld [vmem:[%s135_s0 + $0x5] sm:$0x1]  }
   0x2   :  { %7 = vrot.lane.b32.xlu0 %v65_v0, %s83_s10  ;;  %19 = vrot.lane.b32.xlu1 %v67_v1, %s84_s11  ;;  %s85_s14 = smov 50   ;;  %v66_v3 = vld [vmem:[%s135_s0 + $0x8] sm:$0x1]   ;;  %v68_v4 = vld [vmem:[%s135_s0 + $0x6] sm:$0x1]   ;;  %s86_s19 = smov 80  }
   0x3   :  { %31 = vrot.lane.b32.xlu2 %v69_v2, %s85_s14  ;;  %s87_s20 = smov 60   ;;  %v70_v5 = vld [vmem:[%s135_s0 + $0x4] sm:$0x1]   ;;  %s88_s23 = smov 40   ;;  %v71_v6 = vld [vmem:[%s135_s0 + $0x3] sm:$0x1]  }
   0x4   :  { %v72_v7 = vld [vmem:[%s135_s0 + $0x2] sm:$0x1]   ;;  %s89_s28 = smov 30   ;;  %s90_s29 = smov 20   ;;  %v73_v8 = vld [vmem:[%s135_s0 + $0x1] sm:$0x1]  }
   0x5   :  { %s91_s3 = smov 10   ;;  %v2_v9 = vld [vmem:[%s135_s0] sm:$0x1]   ;;  %vm27_vm4 = vcmask 572896   ;;  %vm33_vm5 = vcmask 490896   ;;  %vm39_vm6 = vcmask 408896  }
   0x6   :  { %4 = vst.msk [vmem:[#allocation0] sm:$0x1] %vm3_vm0, %v2_v9   ;;  %vm45_vm7 = vcmask 326896   ;;  %vm51_vm8 = vcmask 244896   ;;  %vm57_vm9 = vcmask 162896  }
   0xa   :  { %13 = vrot.lane.b32.xlu0 %v66_v3, %s86_s19  ;;  %25 = vrot.lane.b32.xlu1 %v68_v4, %s87_s20 }
   0xb   :  { %37 = vrot.lane.b32.xlu2 %v70_v5, %s88_s23 }
  0x12   :  { %43 = vrot.lane.b32.xlu0 %v71_v6, %s89_s28  ;;  %49 = vrot.lane.b32.xlu1 %v72_v7, %s90_s29 }
  0x13   :  { %55 = vrot.lane.b32.xlu2 %v73_v8, %s91_s3 }
  0x5d   :  { %v32_v10 = vpop.permute.xlu2 %31  }
  0x65   :  { %v38_v11 = vpop.permute.xlu2 %37  }
  0x6d   :  { %v56_v12 = vpop.permute.xlu2 %55  }
  0x74   :  { %v8_v13 = vpop.permute.xlu0 %7   ;;  %v20_v14 = vpop.permute.xlu1 %19  }
  0x75   :  { %10 = vst.msk [vmem:[#allocation0] sm:$0x1] %vm9_vm1, %v8_v13  }
  0x7c   :  { %v14_v15 = vpop.permute.xlu0 %13   ;;  %v26_v16 = vpop.permute.xlu1 %25  }
  0x7d   :  { %16 = vst.msk [vmem:[#allocation0] sm:$0x1] %vm15_vm2, %v14_v15  }
  0x7e   :  { %22 = vst.msk [vmem:[#allocation0] sm:$0x1] %vm21_vm3, %v20_v14  }
  0x7f   :  { %28 = vst.msk [vmem:[#allocation0] sm:$0x1] %vm27_vm4, %v26_v16  }
  0x80   :  { %34 = vst.msk [vmem:[#allocation0] sm:$0x1] %vm33_vm5, %v32_v10  }
  0x81   :  { %40 = vst.msk [vmem:[#allocation0] sm:$0x1] %vm39_vm6, %v38_v11  }
  0x84   :  { %v44_v17 = vpop.permute.xlu0 %43   ;;  %v50_v18 = vpop.permute.xlu1 %49  }
  0x85   :  { %46 = vst.msk [vmem:[#allocation0] sm:$0x1] %vm45_vm7, %v44_v17  }
  0x86   :  { %52 = vst.msk [vmem:[#allocation0] sm:$0x1] %vm51_vm8, %v50_v18  }
  0x87   :  { %58 = vst.msk [vmem:[#allocation0] sm:$0x1] %vm57_vm9, %v56_v12  }
  0x8e   :  { %v61_v19 = vld [vmem:[#allocation0] sm:$0x1] }
  0x8f   :  { %64 = vst [vmem:[%s136_s1] sm:$0x1] %v61_v19 }

// kernel: tile.23
= control target key start
LH: loop header
LB: loop body
LE: loop exit
PB: predicated region body
PF: predicated region fallthrough
CT: control target
= control target key end

     0   :  { %s22_s0 = inlined_call_operand.vmem [shape: f32[20], index: 0, kind: input, shape index: {}]   ;;  %s23_s1 = inlined_call_operand.vmem [shape: f32[8,20], index: 1, kind: output, shape index: {}]  }
   0x1   :  { %v4_v0 = vld [vmem:[%s22_s0] ss:$0 sm:$0xff] }
   0x2   :  { %5 = vst [vmem:[%s23_s1] sm:$0xff] %v4_v0 }

// kernel: tile.24
= control target key start
LH: loop header
LB: loop body
LE: loop exit
PB: predicated region body
PF: predicated region fallthrough
CT: control target
= control target key end

     0   :  { %vm9_vm0 = vcmask 64512   ;;  %s83_s12 = smov 120   ;;  %s84_s13 = smov 80   ;;  %vm3_vm1 = vcmask 162816   ;;  %vm13_vm2 = vcmask 97280   ;;  %vm16_vm3 = vcmask 1048512   ;;  %s133_s0 = inlined_call_operand.vmem [shape: f32[8,20], index: 0, kind: input, shape index: {}]   ;;  %s134_s1 = inlined_call_operand.vmem [shape: f32[1,160], index: 1, kind: output, shape index: {}]  }
   0x1   :  { %v67_v0 = vld [vmem:[%s133_s0 + $0x6] sm:$0x1]   ;;  %v70_v3 = vld [vmem:[%s133_s0 + $0x4] sm:$0x1]   ;;  %v72_v4 = vld [vmem:[%s133_s0 + $0x2] sm:$0x1]  }
   0x2   :  { %v68_v1 = vld [vmem:[%s133_s0 + $0x6] sm:$0x1]   ;;  %26 = vrot.lane.b32.xlu1 %v70_v3, %s84_s13  ;;  %s85_s16 = smov 40   ;;  %v69_v5 = vld [vmem:[%s133_s0 + $0x5] sm:$0x1]   ;;  %s86_s23 = smov 100  }
   0x3   :  { %v10_v2 = vsel %vm9_vm0, %v68_v1, %v67_v0  ;;  %38 = vrot.lane.b32.xlu2 %v72_v4, %s85_s16  ;;  %v71_v6 = vld [vmem:[%s133_s0 + $0x3] sm:$0x1]   ;;  %v73_v7 = vld [vmem:[%s133_s0 + $0x1] sm:$0x1]   ;;  %s87_s24 = smov 60   ;;  %s88_s25 = smov 20  }
   0x4   :  { %11 = vrot.lane.b32.xlu0 %v10_v2, %s83_s12  ;;  %v74_v8 = vld [vmem:[%s133_s0 + $0x7] sm:$0x1]   ;;  %s89_s28 = smov 12   ;;  %v2_v9 = vld [vmem:[%s133_s0] sm:$0x1]   ;;  %vm22_vm4 = vcmask 982816  }
   0x5   :  { %4 = vst.msk [vmem:[#allocation0] sm:$0x1] %vm3_vm1, %v2_v9   ;;  %vm28_vm5 = vcmask 818816   ;;  %vm34_vm6 = vcmask 654816   ;;  %vm40_vm7 = vcmask 490816   ;;  %vm46_vm8 = vcmask 326816  }
   0x6   :  { %vm52_vm9 = vcmask 261216  }
   0xa   :  { %32 = vrot.lane.b32.xlu1 %v71_v6, %s87_s24 }
   0xb   :  { %44 = vrot.lane.b32.xlu2 %v73_v7, %s88_s25 }
   0xc   :  { %20 = vrot.lane.b32.xlu0 %v69_v5, %s86_s23 }
  0x14   :  { %50 = vrot.lane.b32.xlu0 %v74_v8, %s89_s28 }
  0x5d   :  { %v39_v10 = vpop.permute.xlu2 %38  }
  0x65   :  { %v45_v11 = vpop.permute.xlu2 %44  }
  0x74   :  { %v27_v13 = vpop.permute.xlu1 %26  }
  0x76   :  { %v12_v12 = vpop.permute.xlu0 %11  }
  0x77   :  { %15 = vst.msk [vmem:[#allocation0 + $0x8] sm:$0x1] %vm13_vm2, %v12_v12  }
  0x78   :  { %17 = vst.msk [vmem:[#allocation0] sm:$0x1] %vm16_vm3, %v12_v12  }
  0x7c   :  { %v33_v15 = vpop.permute.xlu1 %32  }
  0x7e   :  { %v21_v14 = vpop.permute.xlu0 %20  }
  0x7f   :  { %23 = vst.msk [vmem:[#allocation0] sm:$0x1] %vm22_vm4, %v21_v14  }
  0x80   :  { %29 = vst.msk [vmem:[#allocation0] sm:$0x1] %vm28_vm5, %v27_v13  }
  0x81   :  { %35 = vst.msk [vmem:[#allocation0] sm:$0x1] %vm34_vm6, %v33_v15  }
  0x82   :  { %41 = vst.msk [vmem:[#allocation0] sm:$0x1] %vm40_vm7, %v39_v10  }
  0x83   :  { %47 = vst.msk [vmem:[#allocation0] sm:$0x1] %vm46_vm8, %v45_v11  }
  0x86   :  { %v51_v16 = vpop.permute.xlu0 %50  }
  0x87   :  { %54 = vst.msk [vmem:[#allocation0 + $0x8] sm:$0x1] %vm52_vm9, %v51_v16  }
  0x8a   :  { %v57_v17 = vld [vmem:[#allocation0] sm:$0x1] }
  0x8b   :  { %60 = vst [vmem:[%s134_s1] sm:$0x1] %v57_v17 }
  0x8e   :  { %v62_v18 = vld [vmem:[#allocation0 + $0x8] sm:$0x1] }
  0x8f   :  { %75 = vst [vmem:[%s134_s1 + $0x1] sm:$0x1] %v62_v18 }

// kernel: conv_model_forward.1
= control target key start
LH: loop header
LB: loop body
LE: loop exit
PB: predicated region body
PF: predicated region fallthrough
CT: control target
= control target key end

     0   :  { %s3285_s0 = inlined_call_operand.vmem [shape: bf16[1,200,112], index: 0, kind: input, shape index: {}]   ;;  %s3286_s1 = inlined_call_operand.vmem [shape: bf16[112,100], index: 1, kind: input, shape index: {}]   ;;  %s3287_s2 = inlined_call_operand.vmem [shape: f32[1,100], index: 2, kind: input, shape index: {}]   ;;  %s3288_s3 = inlined_call_operand.vmem [shape: bf16[3,100,160], index: 3, kind: input, shape index: {}]   ;;  %s3289_s4 = inlined_call_operand.vmem [shape: f32[1,160], index: 4, kind: input, shape index: {}]   ;;  %s3290_s5 = inlined_call_operand.vmem [shape: bf16[12,192], index: 5, kind: input, shape index: {}]   ;;  %s3291_s6 = inlined_call_operand.vmem [shape: bf16[160,10], index: 6, kind: input, shape index: {}]   ;;  %s3292_s7 = inlined_call_operand.vmem [shape: f32[1,10], index: 7, kind: input, shape index: {}]   ;;  %s3293_s8 = inlined_call_operand.hbm [shape: f32[12,10], index: 8, kind: output, shape index: {}]  }
   0x1   :  { %v2218_v0 = vld [vmem:[%s3286_s1 + $0x30] sm:$0xff]  ;;  %v2217_v1 = vld [vmem:[%s3286_s1 + $0x28] sm:$0xff] }
   0x2   :  { %220 = vmatpush.bf16.msra.mxu0 %v2218_v0  ;;  %2267 = vmatpush.bf16.msra.mxu2 %v2218_v0 }
   0x3   :  { %2268 = vmatpush.bf16.msra.mxu3 %v2218_v0 }
   0x4   :  { %13 = vsyncpa [#allocation3], 0  ;;  %v2216_v2 = vld [vmem:[%s3286_s1 + $0x20] sm:$0xff]  ;;  %v2215_v3 = vld [vmem:[%s3286_s1 + $0x18] sm:$0xff]  ;;  %vm179_vm0 = vcmask 916480   ;;  %vm635_vm1 = vcmask 1041408  }
   0x5   :  { %v2214_v4 = vld [vmem:[%s3286_s1 + $0x10] sm:$0xff]  ;;  %v2213_v5 = vld [vmem:[%s3286_s1 + $0x8] sm:$0xff]  ;;  %v2212_v6 = vld [vmem:[%s3286_s1] sm:$0xff]  ;;  %vm598_vm2 = vcmask 818176   ;;  %vm432_vm3 = vsmask.f32 7424 }
   0x6   :  { %221 = vmatpush.bf16.msra.mxu0 %v2217_v1  ;;  %2269 = vmatpush.bf16.msra.mxu2 %v2217_v1  ;;  %v2200_v7 = vld [vmem:[%s3285_s0] sm:$0xff]  ;;  %v2210_v9 = vld [vmem:[%s3285_s0 + $0x50] sm:$0xff]  ;;  %v2201_v10 = vld [vmem:[%s3285_s0 + $0x8] sm:$0xff]  ;;  %vm1027_vm4 = vcmask 1046528   ;;  %vm1552_vm5 = vcmask 261120   ;;  %vm1754_vm6 = vcmask 523264  }
   0x7   :  { %2270 = vmatpush.bf16.msra.mxu3 %v2217_v1  ;;  %v2208_v8 = vld [vmem:[%s3285_s0 + $0x40] sm:$0xff]  ;;  %v2209_v11 = vld [vmem:[%s3285_s0 + $0x48] sm:$0xff]  ;;  %v2211_v12 = vld [vmem:[%s3285_s0 + $0x58] sm:$0xff]  ;;  %vm1786_vm7 = vcmask 80896   ;;  %s2319_s29 = smov [#allocation2]   ;;  %s1796_s10 = sshll.u32 %s3293_s8, 4  ;;  %s1797_s10 = int_to_ptr.hbm [resolvable:$true] %s1796_s10 }
   0x8   :  { %v2202_v13 = vld [vmem:[%s3285_s0 + $0x10] sm:$0xff]  ;;  %v55_v14 = vld [vmem:[%s3285_s0 + $0x60] sm:$0xf]  ;;  %v2203_v17 = vld [vmem:[%s3285_s0 + $0x18] sm:$0xff]  ;;  %s1794_s30 = sshll.u32 %s2319_s29, 4  ;;  %vm1788_vm8 = vcmask 76800   ;;  %s1795_s30 = int_to_ptr.vmem [resolvable:$true] %s1794_s30 }
   0x9   :  { %v123_v15 = vunpack.c.l.b16 %v55_v14  ;;  %v2204_v18 = vld [vmem:[%s3285_s0 + $0x20] sm:$0xff]  ;;  %v2205_v19 = vld [vmem:[%s3285_s0 + $0x28] sm:$0xff]  ;;  %v2024_v23 = vld [vmem:[%s3288_s3 + $0x50] sm:$0xf]  ;;  %s2321_s11 = smov 8  }
   0xa   :  { %222 = vmatpush.bf16.msra.mxu0 %v2216_v2  ;;  %2271 = vmatpush.bf16.msra.mxu2 %v2216_v2  ;;  %v2434_v20 = vld [vmem:[%s3288_s3 + $0x60] sm:$0x33]  ;;  %v2230_v24 = vld [vmem:[%s3288_s3 + $0x54] sm:$0xf0]  ;;  %v2228_v28 = vld [vmem:[%s3288_s3 + $0x44] sm:$0xf0] }
   0xb   :  { %2272 = vmatpush.bf16.msra.mxu3 %v2216_v2  ;;  %v136_v16 = vpack.c.b16 %v123_v15, %v123_v15  ;;  %v817_v21 = vunpack.c.l.b16 %v2434_v20  ;;  %v2025_v26 = vor.u32 %v2230_v24, %v2024_v23  ;;  %v2016_v27 = vld [vmem:[%s3288_s3 + $0x40] sm:$0xf]  ;;  %v2206_v30 = vld [vmem:[%s3285_s0 + $0x30] sm:$0xff]  ;;  %v2226_v32 = vld [vmem:[%s3288_s3 + $0x34] sm:$0xf0] }
   0xc   :  { %v2017_v29 = vor.u32 %v2228_v28, %v2016_v27  ;;  %v2008_v31 = vld [vmem:[%s3288_s3 + $0x30] sm:$0xf]  ;;  %v2000_v34 = vld [vmem:[%s3288_s3 + $0x20] sm:$0xf]  ;;  %v2224_v35 = vld [vmem:[%s3288_s3 + $0x24] sm:$0xf0] }
   0xd   :  { %v831_v22 = vpack.c.b16 %v817_v21, %v817_v21  ;;  %v2009_v33 = vor.u32 %v2226_v32, %v2008_v31  ;;  %v2001_v36 = vor.u32 %v2224_v35, %v2000_v34  ;;  %v1909_v37 = vld [vmem:[%s3288_s3 + $0xc8] sm:$0x33]  ;;  %v1992_v40 = vld [vmem:[%s3288_s3 + $0x10] sm:$0xf]  ;;  %v2222_v41 = vld [vmem:[%s3288_s3 + $0x14] sm:$0xf0] }
   0xe   :  { %223 = vmatpush.bf16.msra.mxu0 %v2215_v3  ;;  %2273 = vmatpush.bf16.msra.mxu2 %v2215_v3  ;;  %v570_v38 = vunpack.c.l.b16 %v1909_v37  ;;  %v571_v39 = vunpack.c.h.b16 %v1909_v37  ;;  %v1993_v42 = vor.u32 %v2222_v41, %v1992_v40  ;;  %v1984_v47 = vld [vmem:[%s3288_s3] sm:$0xf]  ;;  %v2220_v48 = vld [vmem:[%s3288_s3 + $0x4] sm:$0xf0]  ;;  %v1952_v50 = vld [vmem:[%s3288_s3 + $0xb8] sm:$0xf] }
   0xf   :  { %2274 = vmatpush.bf16.msra.mxu3 %v2215_v3  ;;  %v870_v25 = vsel %vm635_vm1, %v831_v22, 0  ;;  %v1985_v49 = vor.u32 %v2220_v48, %v1984_v47  ;;  %v2242_v51 = vld [vmem:[%s3288_s3 + $0xbc] sm:$0xf0]  ;;  %v2241_v52 = vld [vmem:[%s3288_s3 + $0xbc] sm:$0xf] }
  0x10   :  { %v584_v43 = vpack.c.b16 %v570_v38, %v570_v38  ;;  %v585_v44 = vpack.c.b16 %v571_v39, %v571_v39  ;;  %v2207_v53 = vld [vmem:[%s3285_s0 + $0x38] sm:$0xff]  ;;  %v1953_v54 = vor.u32 %v2242_v51, %v1952_v50  ;;  %v1954_v55 = vld [vmem:[%s3288_s3 + $0xc0] sm:$0xf0]  ;;  %v1944_v57 = vld [vmem:[%s3288_s3 + $0xa8] sm:$0xf] }
  0x11   :  { %v1957_v56 = vor.u32 %v2241_v52, %v1954_v55  ;;  %v2240_v58 = vld [vmem:[%s3288_s3 + $0xac] sm:$0xf0]  ;;  %v2239_v60 = vld [vmem:[%s3288_s3 + $0xac] sm:$0xf]  ;;  %v1946_v61 = vld [vmem:[%s3288_s3 + $0xb0] sm:$0xf0] }
  0x12   :  { %224 = vmatpush.bf16.msra.mxu0 %v2214_v4  ;;  %2275 = vmatpush.bf16.msra.mxu2 %v2214_v4  ;;  %v637_v45 = vsel %vm635_vm1, %v584_v43, 0  ;;  %v640_v46 = vsel %vm635_vm1, %v585_v44, 0  ;;  %v1945_v59 = vor.u32 %v2240_v58, %v1944_v57  ;;  %v1949_v62 = vor.u32 %v2239_v60, %v1946_v61  ;;  %v1936_v63 = vld [vmem:[%s3288_s3 + $0x98] sm:$0xf]  ;;  %v2238_v0 = vld [vmem:[%s3288_s3 + $0x9c] sm:$0xf0] }
  0x13   :  { %2276 = vmatpush.bf16.msra.mxu3 %v2214_v4  ;;  %2281 = vmatpush.bf16.msra.mxu1 %v637_v45  ;;  %v2237_v1 = vld [vmem:[%s3288_s3 + $0x9c] sm:$0xf]  ;;  %v1937_v2 = vor.u32 %v2238_v0, %v1936_v63  ;;  %v1938_v3 = vld [vmem:[%s3288_s3 + $0xa0] sm:$0xf0]  ;;  %v2548_v14 = vld [vmem:[%s3287_s2] ss:$0 sm:$0xff] }
  0x14   :  { %v1941_v4 = vor.u32 %v2237_v1, %v1938_v3  ;;  %v2232_v21 = vld [vmem:[%s3288_s3 + $0x6c] sm:$0xf0]  ;;  %v2231_v22 = vld [vmem:[%s3288_s3 + $0x6c] sm:$0xf] }
  0x16   :  { %225 = vmatpush.bf16.msra.mxu0 %v2213_v5  ;;  %2277 = vmatpush.bf16.msra.mxu2 %v2213_v5 }
  0x17   :  { %2278 = vmatpush.bf16.msra.mxu3 %v2213_v5  ;;  %2282 = vmatpush.bf16.msra.mxu1 %v1953_v54  ;;  %v1928_v5 = vld [vmem:[%s3288_s3 + $0x88] sm:$0xf] }
  0x1a   :  { %226 = vmatpush.bf16.msra.mxu0 %v2212_v6  ;;  %2279 = vmatpush.bf16.msra.mxu2 %v2212_v6 }
  0x1b   :  { %2280 = vmatpush.bf16.msra.mxu3 %v2212_v6  ;;  %2283 = vmatpush.bf16.msra.mxu1 %v1945_v59  ;;  %v2236_v6 = vld [vmem:[%s3288_s3 + $0x8c] sm:$0xf0] }
  0x1d   :  { %1884 = vmatmul.msk.bf16.vlgmr.msra.gmra.mxu0 %vm179_vm0, %v2200_v7  ;;  %1892 = vmatmul.msk.bf16.vlgmr.msra.gmra.mxu2 %vm179_vm0, %v2208_v8  ;;  %v2235_v7 = vld [vmem:[%s3288_s3 + $0x8c] sm:$0xf]  ;;  %v1929_v8 = vor.u32 %v2236_v6, %v1928_v5 }
  0x1e   :  { %1894 = vmatmul.msk.bf16.vlgmr.msra.gmra.mxu3 %vm179_vm0, %v2210_v9  ;;  %643 = vmatpush.bf16.msrb.mxu0 %v637_v45  ;;  %v1930_v9 = vld [vmem:[%s3288_s3 + $0x90] sm:$0xf0] }
  0x1f   :  { %876 = vmatpush.bf16.msrb.mxu3 %v870_v25  ;;  %712 = vmatpush.bf16.msrb.mxu2 %v640_v46  ;;  %v1914_v25 = vld [vmem:[%s3288_s3 + $0x70] sm:$0xf0] }
  0x20   :  { %2284 = vmatpush.bf16.msra.mxu1 %v1937_v2 }
  0x22   :  { %644 = vmatpush.bf16.msrb.mxu0 %v1953_v54 }
  0x23   :  { %877 = vmatpush.bf16.msrb.mxu3 %v2025_v26  ;;  %713 = vmatpush.bf16.msrb.mxu2 %v1957_v56  ;;  %v1917_v26 = vor.u32 %v2231_v22, %v1914_v25 }
  0x24   :  { %2285 = vmatpush.bf16.msra.mxu1 %v1929_v8 }
  0x26   :  { %645 = vmatpush.bf16.msrb.mxu0 %v1945_v59 }
  0x27   :  { %878 = vmatpush.bf16.msrb.mxu3 %v2017_v29  ;;  %714 = vmatpush.bf16.msrb.mxu2 %v1949_v62 }
  0x2a   :  { %646 = vmatpush.bf16.msrb.mxu0 %v1937_v2 }
  0x2b   :  { %879 = vmatpush.bf16.msrb.mxu3 %v2009_v33  ;;  %715 = vmatpush.bf16.msrb.mxu2 %v1941_v4 }
  0x2d   :  { %1885 = vmatmul.msk.bf16.gmra.mxu0 %vm179_vm0, %v2201_v10  ;;  %1893 = vmatmul.msk.bf16.gmra.mxu2 %vm179_vm0, %v2209_v11  ;;  %v1933_v10 = vor.u32 %v2235_v7, %v1930_v9  ;;  %v1920_v11 = vld [vmem:[%s3288_s3 + $0x78] sm:$0xf] }
  0x2e   :  { %1895 = vmatmul.msk.bf16.gmra.mxu3 %vm179_vm0, %v2211_v12  ;;  %647 = vmatpush.bf16.msrb.mxu0 %v1929_v8  ;;  %v2234_v12 = vld [vmem:[%s3288_s3 + $0x7c] sm:$0xf0] }
  0x2f   :  { %880 = vmatpush.bf16.msrb.mxu3 %v2001_v36  ;;  %716 = vmatpush.bf16.msrb.mxu2 %v1933_v10  ;;  %v1921_v15 = vor.u32 %v2234_v12, %v1920_v11 }
  0x31   :  { %2286 = vmatpush.bf16.msra.mxu1 %v1921_v15 }
  0x32   :  { %648 = vmatpush.bf16.msrb.mxu0 %v1921_v15 }
  0x33   :  { %881 = vmatpush.bf16.msrb.mxu3 %v1993_v42 }
  0x37   :  { %882 = vmatpush.bf16.msrb.mxu3 %v1985_v49 }
  0x3d   :  { %1886 = vmatmul.msk.bf16.gmra.mxu0 %vm179_vm0, %v2202_v13  ;;  %v2233_v13 = vld [vmem:[%s3288_s3 + $0x7c] sm:$0xf] }
  0x3e   :  { %1896 = vmatmul.msk.bf16.gmra.mxu3 %vm179_vm0, %v136_v16  ;;  %v1922_v16 = vld [vmem:[%s3288_s3 + $0x80] sm:$0xf0] }
  0x4d   :  { %1887 = vmatmul.msk.bf16.gmra.mxu0 %vm179_vm0, %v2203_v17 }
  0x5d   :  { %1888 = vmatmul.msk.bf16.gmra.mxu0 %vm179_vm0, %v2204_v18  ;;  %v1925_v18 = vor.u32 %v2233_v13, %v1922_v16 }
  0x5f   :  { %717 = vmatpush.bf16.msrb.mxu2 %v1925_v18 }
  0x63   :  { %718 = vmatpush.bf16.msrb.mxu2 %v1917_v26 }
  0x6d   :  { %1889 = vmatmul.msk.bf16.gmra.mxu0 %vm179_vm0, %v2205_v19  ;;  %v1912_v19 = vld [vmem:[%s3288_s3 + $0x68] sm:$0xf] }
  0x6e   :  { %v1913_v24 = vor.u32 %v2232_v21, %v1912_v19 }
  0x70   :  { %649 = vmatpush.bf16.msrb.mxu0 %v1913_v24  ;;  %2287 = vmatpush.bf16.msra.mxu1 %v1913_v24 }
  0x7d   :  { %1890 = vmatmul.msk.bf16.gmra.mxu0 %vm179_vm0, %v2206_v30 }
  0x8d   :  { %1891 = vmatmul.msk.bf16.gmra.mxu0 %vm179_vm0, %v2207_v53 }
  0x9a   :  { %v228_v17 = vpop.f32.mrf.mxu0 }
  0x9b   :  { %v229_v23 = vadd.f32 %v2548_v14, %v228_v17 }
  0x9d   :  { %v292_v28 = vmax.f32 %v229_v23, 0.0 }
  0x9f   :  { %v317_v32 = vpack.c.bf16 %v292_v28, %v292_v28 }
  0xa0   :  { %v268_v27 = vpop.f32.mrf.mxu2 }
  0xa1   :  { %v278_v30 = vpop.f32.mrf.mxu3  ;;  %v269_v34 = vadd.f32 %v2548_v14, %v268_v27  ;;  %v394_v37 = vunpack.c.l.b16 %v317_v32 }
  0xa2   :  { %v230_v29 = vpop.f32.mrf.mxu0  ;;  %v279_v63 = vadd.f32 %v2548_v14, %v278_v30 }
  0xa3   :  { %v231_v31 = vadd.f32 %v2548_v14, %v230_v29  ;;  %v308_v41 = vmax.f32 %v269_v34, 0.0 }
  0xa4   :  { %v312_v10 = vmax.f32 %v279_v63, 0.0 }
  0xa5   :  { %v293_v33 = vmax.f32 %v231_v31, 0.0  ;;  %v333_v46 = vpack.c.bf16 %v308_v41, %v308_v41 }
  0xa6   :  { %v337_v24 = vpack.c.bf16 %v312_v10, %v312_v10  ;;  %v2227_v10 = vld [vmem:[%s3288_s3 + $0x44] sm:$0xf] }
  0xa7   :  { %v318_v35 = vpack.c.bf16 %v293_v33, %v293_v33  ;;  %v410_v52 = vunpack.c.l.b16 %v333_v46  ;;  %v818_v46 = vunpack.c.h.b16 %v2434_v20 }
  0xa8   :  { %v270_v36 = vpop.f32.mrf.mxu2  ;;  %v414_v34 = vunpack.c.l.b16 %v337_v24 }
  0xa9   :  { %v395_v38 = vunpack.c.l.b16 %v318_v35  ;;  %v271_v39 = vadd.f32 %v2548_v14, %v270_v36  ;;  %v280_v44 = vpop.f32.mrf.mxu3 }
  0xaa   :  { %v233_v40 = vpop.f32.mrf.mxu0  ;;  %v281_v0 = vadd.f32 %v2548_v14, %v280_v44 }
  0xab   :  { %v2569_v42 = vpack.c.b16 %v395_v38, %v394_v37  ;;  %v309_v43 = vmax.f32 %v271_v39, 0.0  ;;  %v234_v45 = vadd.f32 %v2548_v14, %v233_v40 }
  0xac   :  { %v313_v12 = vmax.f32 %v281_v0, 0.0 }
  0xad   :  { %2030 = vmatmul.msk.bf16.vlgmr.msrb.gmra.mxu3 %vm598_vm2, %v2569_v42  ;;  %v334_v47 = vpack.c.bf16 %v309_v43, %v309_v43  ;;  %v294_v49 = vmax.f32 %v234_v45, 0.0  ;;  %v436_v58 = vshll.u32 %v2569_v42, 16  ;;  %v434_v11 = vshrl.u32 %v2569_v42, 16 }
  0xae   :  { %v338_v25 = vpack.c.bf16 %v313_v12, %v313_v12 }
  0xaf   :  { %v411_v53 = vunpack.c.l.b16 %v334_v47  ;;  %v319_v55 = vpack.c.bf16 %v294_v49, %v294_v49  ;;  %v438_v6 = vrot.slane %v436_v58, 1 }
  0xb0   :  { %v273_v48 = vpop.f32.mrf.mxu2  ;;  %v415_v35 = vunpack.c.l.b16 %v338_v25 }
  0xb1   :  { %v274_v50 = vadd.f32 %v2548_v14, %v273_v48  ;;  %v283_v59 = vpop.f32.mrf.mxu3  ;;  %v2577_v60 = vpack.c.b16 %v411_v53, %v410_v52  ;;  %v396_v1 = vunpack.c.l.b16 %v319_v55  ;;  %v439_v18 = vor.u32 %v438_v6, %v434_v11  ;;  %v2018_v11 = vld [vmem:[%s3288_s3 + $0x48] sm:$0xf0] }
  0xb2   :  { %v235_v51 = vpop.f32.mrf.mxu0  ;;  %v2604_v41 = vpack.c.b16 %v415_v35, %v414_v34  ;;  %v284_v43 = vadd.f32 %v2548_v14, %v283_v59  ;;  %v2229_v59 = vld [vmem:[%s3288_s3 + $0x54] sm:$0xf] }
  0xb3   :  { %v236_v54 = vadd.f32 %v2548_v14, %v235_v51  ;;  %v310_v56 = vmax.f32 %v274_v50, 0.0  ;;  %v497_v9 = vshll.u32 %v2577_v60, 16  ;;  %v501_v23 = vshrl.u32 %v2577_v60, 16 }
  0xb4   :  { %v832_v50 = vpack.c.b16 %v818_v46, %v818_v46  ;;  %v314_v52 = vmax.f32 %v284_v43, 0.0  ;;  %v1994_v46 = vld [vmem:[%s3288_s3 + $0x18] sm:$0xf0] }
  0xb5   :  { %v295_v57 = vmax.f32 %v236_v54, 0.0  ;;  %v335_v2 = vpack.c.bf16 %v310_v56, %v310_v56  ;;  %v2590_v22 = vrot.slane %v497_v9, 1  ;;  %v513_v54 = vshll.u32 %v2604_v41, 16 }
  0xb6   :  { %v873_v55 = vsel %vm635_vm1, %v832_v50, 0 }
  0xb7   :  { %v320_v61 = vpack.c.bf16 %v295_v57, %v295_v57  ;;  %v412_v13 = vunpack.c.l.b16 %v335_v2  ;;  %v503_v32 = vor.u32 %v501_v23, %v2590_v22  ;;  %945 = vmatpush.bf16.msrb.mxu1 %v873_v55  ;;  %v515_v2 = vrot.slane %v513_v54, 1  ;;  %v2010_v23 = vld [vmem:[%s3288_s3 + $0x38] sm:$0xf0] }
  0xb8   :  { %v275_v62 = vpop.f32.mrf.mxu2 }
  0xb9   :  { %v397_v3 = vunpack.c.l.b16 %v320_v61  ;;  %v276_v4 = vadd.f32 %v2548_v14, %v275_v62  ;;  %v285_v26 = vpop.f32.mrf.mxu3  ;;  %v2026_v61 = vld [vmem:[%s3288_s3 + $0x58] sm:$0xf0] }
  0xba   :  { %v238_v5 = vpop.f32.mrf.mxu0  ;;  %v286_v44 = vadd.f32 %v2548_v14, %v285_v26  ;;  %v2029_v0 = vor.u32 %v2229_v59, %v2026_v61 }
  0xbb   :  { %v2582_v7 = vpack.c.b16 %v397_v3, %v396_v1  ;;  %v311_v8 = vmax.f32 %v276_v4, 0.0  ;;  %v239_v16 = vadd.f32 %v2548_v14, %v238_v5  ;;  %v339_v1 = vpack.c.bf16 %v314_v52, %v314_v52 }
  0xbc   :  { %v315_v53 = vmax.f32 %v286_v44, 0.0  ;;  %946 = vmatpush.bf16.msrb.mxu1 %v2029_v0 }
  0xbd   :  { %v336_v15 = vpack.c.bf16 %v311_v8, %v311_v8  ;;  %2031 = vmatmul.msk.bf16.gmra.mxu3 %vm598_vm2, %v2582_v7  ;;  %v441_v17 = vshll.u32 %v2582_v7, 16  ;;  %v296_v28 = vmax.f32 %v239_v16, 0.0  ;;  %v445_v57 = vshrl.u32 %v2582_v7, 16 }
  0xbe   :  { %v340_v6 = vpack.c.bf16 %v315_v53, %v315_v53 }
  0xbf   :  { %v413_v19 = vunpack.c.l.b16 %v336_v15  ;;  %v443_v21 = vrot.slane %v441_v17, 1  ;;  %v321_v36 = vpack.c.bf16 %v296_v28, %v296_v28  ;;  %v416_v15 = vunpack.c.l.b16 %v339_v1 }
  0xc1   :  { %v2593_v27 = vpack.c.b16 %v413_v19, %v412_v13  ;;  %v444_v29 = vsel %vm432_vm3, %v439_v18, %v443_v21  ;;  %v288_v45 = vpop.f32.mrf.mxu3  ;;  %v398_v47 = vunpack.c.l.b16 %v321_v36  ;;  %v447_v62 = vor.u32 %v445_v57, %v443_v21  ;;  %v2225_v21 = vld [vmem:[%s3288_s3 + $0x34] sm:$0xf]  ;;  %v2219_v57 = vld [vmem:[%s3288_s3 + $0x4] sm:$0xf] }
  0xc2   :  { %v240_v30 = vpop.f32.mrf.mxu0  ;;  %1958 = vmatmul.msk.bf16.vlgmr.msrb.gmra.mxu0 %vm598_vm2, %v444_v29  ;;  %1970 = vmatmul.msk.bf16.vlgmr.msrb.gmra.mxu2 %vm598_vm2, %v444_v29  ;;  %v2021_v13 = vor.u32 %v2227_v10, %v2018_v11  ;;  %v417_v18 = vunpack.c.l.b16 %v340_v6  ;;  %v2013_v25 = vor.u32 %v2225_v21, %v2010_v23  ;;  %v289_v26 = vadd.f32 %v2548_v14, %v288_v45  ;;  %v2221_v45 = vld [vmem:[%s3288_s3 + $0x14] sm:$0xf] }
  0xc3   :  { %v241_v31 = vadd.f32 %v2548_v14, %v240_v30  ;;  %v505_v33 = vshll.u32 %v2593_v27, 16  ;;  %v509_v58 = vshrl.u32 %v2593_v27, 16 }
  0xc4   :  { %947 = vmatpush.bf16.msrb.mxu1 %v2021_v13  ;;  %v2649_v30 = vpack.c.b16 %v417_v18, %v416_v15  ;;  %v316_v36 = vmax.f32 %v289_v26, 0.0 }
  0xc5   :  { %v297_v37 = vmax.f32 %v241_v31, 0.0  ;;  %v507_v38 = vrot.slane %v505_v33, 1  ;;  %v2002_v33 = vld [vmem:[%s3288_s3 + $0x28] sm:$0xf0] }
  0xc6   :  { %v521_v44 = vshll.u32 %v2649_v30, 16  ;;  %v341_v50 = vpack.c.bf16 %v316_v36, %v316_v36 }
  0xc7   :  { %v322_v39 = vpack.c.bf16 %v297_v37, %v297_v37  ;;  %v2602_v40 = vsel %vm432_vm3, %v503_v32, %v507_v38  ;;  %v511_v8 = vor.u32 %v509_v58, %v507_v38  ;;  %v2223_v32 = vld [vmem:[%s3288_s3 + $0x24] sm:$0xf]  ;;  %v517_v37 = vshrl.u32 %v2604_v41, 16 }
  0xc8   :  { %1966 = vmatmul.msk.bf16.vlgmr.msra.gmra.mxu1 %vm598_vm2, %v2602_v40  ;;  %v2005_v35 = vor.u32 %v2223_v32, %v2002_v33  ;;  %v523_v55 = vrot.slane %v521_v44, 1  ;;  %v418_v61 = vunpack.c.l.b16 %v341_v50 }
  0xc9   :  { %v399_v48 = vunpack.c.l.b16 %v322_v39  ;;  %v290_v3 = vpop.f32.mrf.mxu3  ;;  %v2638_v19 = vsel %vm432_vm3, %v511_v8, %v515_v2  ;;  %948 = vmatpush.bf16.msrb.mxu1 %v2013_v25  ;;  %v519_v54 = vor.u32 %v517_v37, %v515_v2 }
  0xca   :  { %v243_v49 = vpop.f32.mrf.mxu0  ;;  %v2685_v2 = vpack.c.b16 %v418_v61, %v418_v61 }
  0xcb   :  { %v2611_v51 = vpack.c.b16 %v399_v48, %v398_v47  ;;  %v244_v56 = vadd.f32 %v2548_v14, %v243_v49  ;;  %v1997_v49 = vor.u32 %v2221_v45, %v1994_v46  ;;  %v2683_v0 = vsel %vm432_vm3, %v519_v54, %v523_v55 }
  0xcc   :  { %v529_v8 = vshll.u32 %v2685_v2, 16 }
  0xcd   :  { %2032 = vmatmul.msk.bf16.gmra.mxu3 %vm598_vm2, %v2611_v51  ;;  %v449_v20 = vshll.u32 %v2611_v51, 16  ;;  %v298_v4 = vmax.f32 %v244_v56, 0.0  ;;  %v453_v39 = vshrl.u32 %v2611_v51, 16  ;;  %949 = vmatpush.bf16.msrb.mxu1 %v2005_v35 }
  0xcf   :  { %v451_v63 = vrot.slane %v449_v20, 1  ;;  %v323_v16 = vpack.c.bf16 %v298_v4, %v298_v4  ;;  %v1986_v20 = vld [vmem:[%s3288_s3 + $0x8] sm:$0xf0] }
  0xd0   :  { %v1989_v59 = vor.u32 %v2219_v57, %v1986_v20 }
  0xd1   :  { %v452_v5 = vsel %vm432_vm3, %v447_v62, %v451_v63  ;;  %v400_v28 = vunpack.c.l.b16 %v323_v16  ;;  %v455_v47 = vor.u32 %v453_v39, %v451_v63  ;;  %950 = vmatpush.bf16.msrb.mxu1 %v1997_v49  ;;  %v531_v16 = vrot.slane %v529_v8, 1 }
  0xd2   :  { %v245_v9 = vpop.f32.mrf.mxu0  ;;  %1959 = vmatmul.msk.bf16.gmra.mxu0 %vm598_vm2, %v452_v5  ;;  %1971 = vmatmul.msk.bf16.gmra.mxu2 %vm598_vm2, %v452_v5 }
  0xd3   :  { %v246_v12 = vadd.f32 %v2548_v14, %v245_v9 }
  0xd5   :  { %v299_v17 = vmax.f32 %v246_v12, 0.0  ;;  %951 = vmatpush.bf16.msrb.mxu1 %v1989_v59  ;;  %v525_v12 = vshrl.u32 %v2649_v30, 16 }
  0xd7   :  { %v324_v24 = vpack.c.bf16 %v299_v17, %v299_v17  ;;  %v527_v21 = vor.u32 %v525_v12, %v523_v55 }
  0xd8   :  { %1967 = vmatmul.msk.bf16.gmra.mxu1 %vm598_vm2, %v2638_v19 }
  0xd9   :  { %v401_v29 = vunpack.c.l.b16 %v324_v24 }
  0xda   :  { %v248_v31 = vpop.f32.mrf.mxu0 }
  0xdb   :  { %v2657_v34 = vpack.c.b16 %v401_v29, %v400_v28  ;;  %v249_v38 = vadd.f32 %v2548_v14, %v248_v31  ;;  %v2703_v28 = vsel %vm432_vm3, %v527_v21, %v531_v16 }
  0xdd   :  { %2033 = vmatmul.msk.bf16.gmra.mxu3 %vm598_vm2, %v2657_v34  ;;  %v457_v43 = vshll.u32 %v2657_v34, 16  ;;  %v300_v52 = vmax.f32 %v249_v38, 0.0  ;;  %v461_v10 = vshrl.u32 %v2657_v34, 16 }
  0xdf   :  { %v459_v48 = vrot.slane %v457_v43, 1  ;;  %v325_v62 = vpack.c.bf16 %v300_v52, %v300_v52 }
  0xe1   :  { %v460_v53 = vsel %vm432_vm3, %v455_v47, %v459_v48  ;;  %v402_v3 = vunpack.c.l.b16 %v325_v62  ;;  %v463_v13 = vor.u32 %v461_v10, %v459_v48 }
  0xe2   :  { %v250_v56 = vpop.f32.mrf.mxu0  ;;  %1960 = vmatmul.msk.bf16.gmra.mxu0 %vm598_vm2, %v460_v53  ;;  %1972 = vmatmul.msk.bf16.gmra.mxu2 %vm598_vm2, %v460_v53 }
  0xe3   :  { %v251_v58 = vadd.f32 %v2548_v14, %v250_v56 }
  0xe5   :  { %v301_v63 = vmax.f32 %v251_v58, 0.0 }
  0xe7   :  { %v326_v1 = vpack.c.bf16 %v301_v63, %v301_v63 }
  0xe8   :  { %1968 = vmatmul.msk.bf16.gmra.mxu1 %vm598_vm2, %v2683_v0 }
  0xe9   :  { %v403_v4 = vunpack.c.l.b16 %v326_v1 }
  0xea   :  { %v253_v5 = vpop.f32.mrf.mxu0 }
  0xeb   :  { %v2689_v6 = vpack.c.b16 %v403_v4, %v402_v3  ;;  %v254_v9 = vadd.f32 %v2548_v14, %v253_v5 }
  0xed   :  { %2034 = vmatmul.msk.bf16.gmra.mxu3 %vm598_vm2, %v2689_v6  ;;  %v465_v11 = vshll.u32 %v2689_v6, 16  ;;  %v302_v17 = vmax.f32 %v254_v9, 0.0  ;;  %v469_v37 = vshrl.u32 %v2689_v6, 16 }
  0xef   :  { %v467_v15 = vrot.slane %v465_v11, 1  ;;  %v327_v25 = vpack.c.bf16 %v302_v17, %v302_v17  ;;  %v2066_v17 = vld [vmem:[%s3288_s3 + $0x130] sm:$0x33] }
  0xf0   :  { %v1091_v21 = vunpack.c.h.b16 %v2066_v17 }
  0xf1   :  { %v468_v18 = vsel %vm432_vm3, %v463_v13, %v467_v15  ;;  %v404_v31 = vunpack.c.l.b16 %v327_v25  ;;  %v471_v39 = vor.u32 %v469_v37, %v467_v15 }
  0xf2   :  { %v255_v23 = vpop.f32.mrf.mxu0  ;;  %1961 = vmatmul.msk.bf16.gmra.mxu0 %vm598_vm2, %v468_v18  ;;  %1973 = vmatmul.msk.bf16.gmra.mxu2 %vm598_vm2, %v468_v18 }
  0xf3   :  { %v256_v24 = vadd.f32 %v2548_v14, %v255_v23  ;;  %v1105_v23 = vpack.c.b16 %v1091_v21, %v1091_v21 }
  0xf5   :  { %v303_v26 = vmax.f32 %v256_v24, 0.0 }
  0xf7   :  { %v328_v29 = vpack.c.bf16 %v303_v26, %v303_v26  ;;  %v1158_v26 = vsel %vm635_vm1, %v1105_v23, 0  ;;  %v2246_v23 = vld [vmem:[%s3288_s3 + $0xe4] sm:$0xf0] }
  0xf8   :  { %1969 = vmatmul.msk.bf16.gmra.mxu1 %vm598_vm2, %v2703_v28  ;;  %1230 = vmatpush.bf16.msra.mxu3 %v1158_v26 }
  0xf9   :  { %v405_v32 = vunpack.c.l.b16 %v328_v29  ;;  %v2253_v29 = vld [vmem:[%s3288_s3 + $0x124] sm:$0xf] }
  0xfa   :  { %v258_v33 = vpop.f32.mrf.mxu0 }
  0xfb   :  { %v2707_v35 = vpack.c.b16 %v405_v32, %v404_v31  ;;  %v259_v36 = vadd.f32 %v2548_v14, %v258_v33  ;;  %v2111_v31 = vld [vmem:[%s3288_s3 + $0x128] sm:$0xf0]  ;;  %v2103_v33 = vld [vmem:[%s3288_s3 + $0x118] sm:$0xf0] }
  0xfc   :  { %v2114_v32 = vor.u32 %v2253_v29, %v2111_v31  ;;  %v2069_v29 = vld [vmem:[%s3288_s3 + $0xd0] sm:$0xf]  ;;  %v2244_v31 = vld [vmem:[%s3288_s3 + $0xd4] sm:$0xf0] }
  0xfd   :  { %2035 = vmatmul.msk.bf16.gmra.mxu3 %vm598_vm2, %v2707_v35  ;;  %v473_v38 = vshll.u32 %v2707_v35, 16  ;;  %v304_v44 = vmax.f32 %v259_v36, 0.0  ;;  %v477_v57 = vshrl.u32 %v2707_v35, 16 }
  0xfe   :  { %1231 = vmatpush.bf16.msra.mxu3 %v2114_v32 }
  0xff   :  { %v475_v43 = vrot.slane %v473_v38, 1  ;;  %v329_v48 = vpack.c.bf16 %v304_v44, %v304_v44  ;;  %v2249_v38 = vld [vmem:[%s3288_s3 + $0x104] sm:$0xf]  ;;  %v2247_v44 = vld [vmem:[%s3288_s3 + $0xf4] sm:$0xf] }
 0x101   :  { %v476_v45 = vsel %vm432_vm3, %v471_v39, %v475_v43  ;;  %v406_v52 = vunpack.c.l.b16 %v329_v48  ;;  %v479_v58 = vor.u32 %v477_v57, %v475_v43  ;;  %v2095_v39 = vld [vmem:[%s3288_s3 + $0x108] sm:$0xf0]  ;;  %v1090_v48 = vunpack.c.l.b16 %v2066_v17  ;;  %v2248_v17 = vld [vmem:[%s3288_s3 + $0xf4] sm:$0xf0] }
 0x102   :  { %v260_v46 = vpop.f32.mrf.mxu0  ;;  %1962 = vmatmul.msk.bf16.gmra.mxu0 %vm598_vm2, %v476_v45  ;;  %1974 = vmatmul.msk.bf16.gmra.mxu2 %vm598_vm2, %v476_v45  ;;  %v2098_v43 = vor.u32 %v2249_v38, %v2095_v39  ;;  %v2087_v45 = vld [vmem:[%s3288_s3 + $0xf8] sm:$0xf0] }
 0x103   :  { %v261_v47 = vadd.f32 %v2548_v14, %v260_v46 }
 0x105   :  { %v305_v49 = vmax.f32 %v261_v47, 0.0  ;;  %v2090_v47 = vor.u32 %v2247_v44, %v2087_v45  ;;  %v1028_v44 = vrot.slane %v2569_v42, 1 }
 0x107   :  { %v330_v50 = vpack.c.bf16 %v305_v49, %v305_v49  ;;  %v2245_v49 = vld [vmem:[%s3288_s3 + $0xe4] sm:$0xf] }
 0x108   :  { %2042 = vmatmul.msk.bf16.vlgmr.msrb.gmra.mxu1 %vm598_vm2, %v2569_v42  ;;  %v1031_v42 = vrot.slane %v2611_v51, 1 }
 0x109   :  { %v407_v53 = vunpack.c.l.b16 %v330_v50  ;;  %v2079_v50 = vld [vmem:[%s3288_s3 + $0xe8] sm:$0xf0] }
 0x10a   :  { %v263_v54 = vpop.f32.mrf.mxu0 }
 0x10b   :  { %v2720_v55 = vpack.c.b16 %v407_v53, %v406_v52  ;;  %v264_v56 = vadd.f32 %v2548_v14, %v263_v54  ;;  %v2082_v52 = vor.u32 %v2245_v49, %v2079_v50  ;;  %v1104_v53 = vpack.c.b16 %v1090_v48, %v1090_v48 }
 0x10d   :  { %2036 = vmatmul.msk.bf16.gmra.mxu3 %vm598_vm2, %v2720_v55  ;;  %v481_v20 = vshll.u32 %v2720_v55, 16  ;;  %v306_v61 = vmax.f32 %v264_v56, 0.0  ;;  %v485_v11 = vshrl.u32 %v2720_v55, 16  ;;  %v1155_v57 = vsel %vm635_vm1, %v1104_v53, 0 }
 0x10e   :  { %1161 = vmatpush.bf16.msra.mxu2 %v1155_v57 }
 0x10f   :  { %v483_v59 = vrot.slane %v481_v20, 1  ;;  %v331_v3 = vpack.c.bf16 %v306_v61, %v306_v61  ;;  %v2071_v20 = vld [vmem:[%s3288_s3 + $0xd8] sm:$0xf0]  ;;  %v2109_v61 = vld [vmem:[%s3288_s3 + $0x120] sm:$0xf] }
 0x111   :  { %v484_v62 = vsel %vm432_vm3, %v479_v58, %v483_v59  ;;  %v408_v8 = vunpack.c.l.b16 %v331_v3  ;;  %v487_v13 = vor.u32 %v485_v11, %v483_v59  ;;  %v2093_v11 = vld [vmem:[%s3288_s3 + $0x100] sm:$0xf] }
 0x112   :  { %v265_v63 = vpop.f32.mrf.mxu0  ;;  %1963 = vmatmul.msk.bf16.gmra.mxu0 %vm598_vm2, %v484_v62  ;;  %1975 = vmatmul.msk.bf16.gmra.mxu2 %vm598_vm2, %v484_v62  ;;  %v2254_v62 = vld [vmem:[%s3288_s3 + $0x124] sm:$0xf0] }
 0x113   :  { %v266_v1 = vadd.f32 %v2548_v14, %v265_v63  ;;  %v2110_v63 = vor.u32 %v2254_v62, %v2109_v61 }
 0x115   :  { %v307_v4 = vmax.f32 %v266_v1, 0.0  ;;  %1162 = vmatpush.bf16.msra.mxu2 %v2110_v63 }
 0x117   :  { %v332_v5 = vpack.c.bf16 %v307_v4, %v307_v4  ;;  %v2101_v4 = vld [vmem:[%s3288_s3 + $0x110] sm:$0xf] }
 0x118   :  { %2043 = vmatmul.msk.bf16.gmra.mxu1 %vm598_vm2, %v2582_v7 }
 0x119   :  { %v409_v9 = vunpack.c.l.b16 %v332_v5  ;;  %v2252_v5 = vld [vmem:[%s3288_s3 + $0x114] sm:$0xf0] }
 0x11b   :  { %v2733_v10 = vpack.c.b16 %v409_v9, %v408_v8  ;;  %v2102_v8 = vor.u32 %v2252_v5, %v2101_v4 }
 0x11d   :  { %2037 = vmatmul.msk.bf16.gmra.mxu3 %vm598_vm2, %v2733_v10  ;;  %v489_v12 = vshll.u32 %v2733_v10, 16  ;;  %v493_v16 = vshrl.u32 %v2733_v10, 16  ;;  %1163 = vmatpush.bf16.msra.mxu2 %v2102_v8 }
 0x11f   :  { %v491_v15 = vrot.slane %v489_v12, 1  ;;  %v2250_v12 = vld [vmem:[%s3288_s3 + $0x104] sm:$0xf0] }
 0x121   :  { %v492_v14 = vsel %vm432_vm3, %v487_v13, %v491_v15  ;;  %v495_v18 = vor.u32 %v493_v16, %v491_v15  ;;  %v2094_v13 = vor.u32 %v2250_v12, %v2093_v11  ;;  %v2085_v16 = vld [vmem:[%s3288_s3 + $0xf0] sm:$0xf] }
 0x122   :  { %1964 = vmatmul.msk.bf16.gmra.mxu0 %vm598_vm2, %v492_v14  ;;  %1976 = vmatmul.msk.bf16.gmra.mxu2 %vm598_vm2, %v492_v14 }
 0x123   :  { %v500_v25 = vsel %vm432_vm3, %v495_v18, %v2590_v22  ;;  %v2251_v22 = vld [vmem:[%s3288_s3 + $0x114] sm:$0xf]  ;;  %1164 = vmatpush.bf16.msra.mxu2 %v2094_v13  ;;  %v2086_v18 = vor.u32 %v2248_v17, %v2085_v16 }
 0x124   :  { %v2106_v37 = vor.u32 %v2251_v22, %v2103_v33  ;;  %v2070_v22 = vor.u32 %v2244_v31, %v2069_v29 }
 0x126   :  { %1232 = vmatpush.bf16.msra.mxu3 %v2106_v37 }
 0x127   :  { %1165 = vmatpush.bf16.msra.mxu2 %v2086_v18 }
 0x128   :  { %2044 = vmatmul.msk.bf16.gmra.mxu1 %vm598_vm2, %v2611_v51  ;;  %v1033_v51 = vrot.slane %v2657_v34, 1 }
 0x12a   :  { %1233 = vmatpush.bf16.msra.mxu3 %v2098_v43  ;;  %v1029_v43 = vrot.slane %v2582_v7, 1 }
 0x12c   :  { %v1030_v45 = vsel %vm1027_vm4, %v1028_v44, %v1029_v43 }
 0x12d   :  { %2038 = vmatmul.msk.bf16.gmra.mxu3 %vm598_vm2, %v2577_v60 }
 0x12e   :  { %1234 = vmatpush.bf16.msra.mxu3 %v2090_v47 }
 0x130   :  { %v2750_v24 = vpop.f32.mrf.mxu3 }
 0x132   :  { %1965 = vmatmul.msk.bf16.gmra.mxu0 %vm598_vm2, %v500_v25  ;;  %1977 = vmatmul.msk.bf16.gmra.mxu2 %vm598_vm2, %v500_v25 }
 0x133   :  { %1235 = vmatpush.bf16.msra.mxu3 %v2082_v52  ;;  %v1032_v52 = vsel %vm1027_vm4, %v1029_v43, %v1031_v42 }
 0x138   :  { %v2769_v36 = vpop.f32.mrf.mxu3  ;;  %2045 = vmatmul.msk.bf16.gmra.mxu1 %vm598_vm2, %v2657_v34  ;;  %v1035_v34 = vrot.slane %v2689_v6, 1 }
 0x13a   :  { %v1036_v11 = vsel %vm1027_vm4, %v1033_v51, %v1035_v34 }
 0x13d   :  { %2039 = vmatmul.msk.bf16.gmra.mxu3 %vm598_vm2, %v2593_v27 }
 0x140   :  { %v2787_v46 = vpop.f32.mrf.mxu3 }
 0x142   :  { %1978 = vmatmul.msk.bf16.gmra.mxu2 %vm598_vm2, %v2602_v40  ;;  %v2243_v40 = vld [vmem:[%s3288_s3 + $0xd4] sm:$0xf] }
 0x143   :  { %v2074_v59 = vor.u32 %v2243_v40, %v2071_v20 }
 0x145   :  { %v2797_v54 = vpop.f32.mrf.mxu1  ;;  %v2799_v56 = vpop.f32.mrf.mxu2  ;;  %1236 = vmatpush.bf16.msra.mxu3 %v2074_v59  ;;  %v1034_v59 = vsel %vm1027_vm4, %v1031_v42, %v1033_v51 }
 0x146   :  { %3294 = vst [vmem:[#allocation5_spill] sm:$0xff] %v2797_v54 }
 0x148   :  { %v2808_v58 = vpop.f32.mrf.mxu3  ;;  %2046 = vmatmul.msk.bf16.gmra.mxu1 %vm598_vm2, %v2689_v6  ;;  %v1037_v6 = vrot.slane %v2707_v35, 1 }
 0x14d   :  { %v2818_v1 = vpop.f32.mrf.mxu1  ;;  %v2820_v3 = vpop.f32.mrf.mxu2  ;;  %2040 = vmatmul.msk.bf16.gmra.mxu3 %vm598_vm2, %v2604_v41 }
 0x14e   :  { %3295 = vst [vmem:[#allocation6_spill] sm:$0xff] %v2818_v1 }
 0x150   :  { %v2830_v9 = vpop.f32.mrf.mxu3 }
 0x152   :  { %1979 = vmatmul.msk.bf16.gmra.mxu2 %vm598_vm2, %v2638_v19  ;;  %v2077_v19 = vld [vmem:[%s3288_s3 + $0xe0] sm:$0xf] }
 0x153   :  { %v2078_v25 = vor.u32 %v2246_v23, %v2077_v19  ;;  %v1038_v19 = vsel %vm1027_vm4, %v1035_v34, %v1037_v6  ;;  %v1041_v34 = vrot.slane %v2733_v10, 1 }
 0x155   :  { %v2840_v15 = vpop.f32.mrf.mxu1  ;;  %v2842_v14 = vpop.f32.mrf.mxu2  ;;  %1166 = vmatpush.bf16.msra.mxu2 %v2078_v25 }
 0x156   :  { %3296 = vst [vmem:[#allocation7_spill] sm:$0xff] %v2840_v15  ;;  %v1045_v15 = vrot.slane %v2593_v27, 1 }
 0x158   :  { %v2850_v21 = vpop.f32.mrf.mxu3  ;;  %2047 = vmatmul.msk.bf16.gmra.mxu1 %vm598_vm2, %v2707_v35  ;;  %v1039_v35 = vrot.slane %v2720_v55, 1 }
 0x159   :  { %1167 = vmatpush.bf16.msra.mxu2 %v2070_v22 }
 0x15a   :  { %v1040_v44 = vsel %vm1027_vm4, %v1037_v6, %v1039_v35 }
 0x15d   :  { %v2860_v26 = vpop.f32.mrf.mxu2  ;;  %2041 = vmatmul.msk.bf16.gmra.mxu3 %vm598_vm2, %v2649_v30  ;;  %v2870_v32 = vpop.f32.mrf.mxu1 }
 0x15e   :  { %3297 = vst [vmem:[#allocation8_spill] sm:$0xff] %v2870_v32 }
 0x160   :  { %v2872_v33 = vpop.f32.mrf.mxu3 }
 0x162   :  { %1980 = vmatmul.msk.bf16.gmra.mxu2 %vm598_vm2, %v2683_v0 }
 0x165   :  { %v2876_v37 = vpop.f32.mrf.mxu2  ;;  %v2878_v38 = vpop.f32.mrf.mxu1 }
 0x166   :  { %3298 = vst [vmem:[#allocation9_spill] sm:$0xff] %v2878_v38  ;;  %v1043_v38 = vrot.slane %v2577_v60, 1 }
 0x168   :  { %v2880_v39 = vpop.f32.mrf.mxu3  ;;  %2048 = vmatmul.msk.bf16.gmra.mxu1 %vm598_vm2, %v2720_v55  ;;  %v1042_v55 = vsel %vm1027_vm4, %v1039_v35, %v1041_v34  ;;  %v2264_v35 = vld [vmem:[%s3291_s6 + $0x48] sm:$0xff] }
 0x169   :  { %1664 = vmatpush.bf16.msra.mxu1 %v2264_v35  ;;  %v651_v35 = vpop.f32.mrf.mxu0 }
 0x16d   :  { %v2887_v47 = vpop.f32.mrf.mxu2  ;;  %2127 = vmatmul.msk.bf16.vlgmr.msra.gmra.mxu3 %vm598_vm2, %v1030_v45  ;;  %v2892_v48 = vpop.f32.mrf.mxu1 }
 0x16e   :  { %3299 = vst [vmem:[#allocation10_spill] sm:$0xff] %v2892_v48 }
 0x170   :  { %v2890_v0 = vpop.f32.mrf.mxu3 }
 0x172   :  { %1981 = vmatmul.msk.bf16.gmra.mxu2 %vm598_vm2, %v2703_v28 }
 0x175   :  { %v2896_v49 = vpop.f32.mrf.mxu2  ;;  %v2903_v7 = vpop.f32.mrf.mxu1 }
 0x176   :  { %3300 = vst [vmem:[#allocation11_spill] sm:$0xff] %v2903_v7 }
 0x178   :  { %v2898_v50 = vpop.f32.mrf.mxu3  ;;  %2049 = vmatmul.msk.bf16.gmra.mxu1 %vm598_vm2, %v2733_v10  ;;  %v2262_v10 = vld [vmem:[%s3291_s6 + $0x38] sm:$0xff] }
 0x179   :  { %1589 = vmatpush.bf16.msra.mxu0 %v2262_v10  ;;  %v2263_v10 = vld [vmem:[%s3291_s6 + $0x40] sm:$0xff] }
 0x17a   :  { %1665 = vmatpush.bf16.msra.mxu1 %v2263_v10 }
 0x17d   :  { %v2906_v53 = vpop.f32.mrf.mxu2  ;;  %2128 = vmatmul.msk.bf16.gmra.mxu3 %vm598_vm2, %v1032_v52  ;;  %v2914_v40 = vpop.f32.mrf.mxu1 }
 0x17e   :  { %3301 = vst [vmem:[#allocation12_spill] sm:$0xff] %v2914_v40 }
 0x180   :  { %v2909_v57 = vpop.f32.mrf.mxu3 }
 0x182   :  { %2115 = vmatmul.msk.bf16.vlgmr.msra.gmra.mxu2 %vm598_vm2, %v1030_v45 }
 0x185   :  { %v2912_v28 = vpop.f32.mrf.mxu2  ;;  %v2925_v62 = vpop.f32.mrf.mxu1 }
 0x188   :  { %v2916_v20 = vpop.f32.mrf.mxu3  ;;  %2050 = vmatmul.msk.bf16.gmra.mxu1 %vm598_vm2, %v2577_v60  ;;  %v2260_v60 = vld [vmem:[%s3291_s6 + $0x28] sm:$0xff] }
 0x18d   :  { %v2922_v61 = vpop.f32.mrf.mxu2  ;;  %2129 = vmatmul.msk.bf16.gmra.mxu3 %vm598_vm2, %v1034_v59  ;;  %v2937_v8 = vpop.f32.mrf.mxu1 }
 0x18e   :  { %v956_v54 = vadd.f32 %v2937_v8, %v2820_v3 }
 0x190   :  { %v2927_v63 = vpop.f32.mrf.mxu3 }
 0x192   :  { %2116 = vmatmul.msk.bf16.gmra.mxu2 %vm598_vm2, %v1032_v52 }
 0x195   :  { %v2930_v4 = vpop.f32.mrf.mxu2  ;;  %v2946_v16 = vpop.f32.mrf.mxu1 }
 0x198   :  { %v2932_v5 = vpop.f32.mrf.mxu3  ;;  %2051 = vmatmul.msk.bf16.gmra.mxu1 %vm598_vm2, %v2593_v27 }
 0x19d   :  { %v2940_v12 = vpop.f32.mrf.mxu2  ;;  %2130 = vmatmul.msk.bf16.gmra.mxu3 %vm598_vm2, %v1036_v11  ;;  %v2959_v25 = vpop.f32.mrf.mxu1 }
 0x1a0   :  { %v2943_v13 = vpop.f32.mrf.mxu3 }
 0x1a1   :  { %3302 = vst [vmem:[#allocation13_spill] sm:$0xff] %v2943_v13 }
 0x1a2   :  { %2117 = vmatmul.msk.bf16.gmra.mxu2 %vm598_vm2, %v1034_v59 }
 0x1a5   :  { %v2948_v17 = vpop.f32.mrf.mxu2  ;;  %v2966_v22 = vpop.f32.mrf.mxu1 }
 0x1a8   :  { %v2950_v18 = vpop.f32.mrf.mxu3  ;;  %2052 = vmatmul.msk.bf16.gmra.mxu1 %vm598_vm2, %v2604_v41 }
 0x1a9   :  { %3303 = vst [vmem:[#allocation14_spill] sm:$0xff] %v2950_v18 }
 0x1ad   :  { %v2956_v23 = vpop.f32.mrf.mxu2  ;;  %2131 = vmatmul.msk.bf16.gmra.mxu3 %vm598_vm2, %v1038_v19  ;;  %v2979_v52 = vpop.f32.mrf.mxu1 }
 0x1b0   :  { %v2961_v29 = vpop.f32.mrf.mxu3 }
 0x1b1   :  { %3304 = vst [vmem:[#allocation15_spill] sm:$0xff] %v2961_v29 }
 0x1b2   :  { %2118 = vmatmul.msk.bf16.gmra.mxu2 %vm598_vm2, %v1036_v11 }
 0x1b5   :  { %v2964_v31 = vpop.f32.mrf.mxu2  ;;  %v2987_v11 = vpop.f32.mrf.mxu1 }
 0x1b8   :  { %v2968_v43 = vpop.f32.mrf.mxu3  ;;  %2053 = vmatmul.msk.bf16.gmra.mxu1 %vm598_vm2, %v2649_v30 }
 0x1b9   :  { %3305 = vst [vmem:[#allocation16_spill] sm:$0xff] %v2968_v43 }
 0x1bd   :  { %v2974_v45 = vpop.f32.mrf.mxu2  ;;  %2132 = vmatmul.msk.bf16.gmra.mxu3 %vm598_vm2, %v1040_v44 }
 0x1c0   :  { %v2977_v42 = vpop.f32.mrf.mxu3 }
 0x1c1   :  { %3306 = vst [vmem:[#allocation17_spill] sm:$0xff] %v2977_v42  ;;  %v2258_v42 = vld [vmem:[%s3291_s6 + $0x18] sm:$0xff] }
 0x1c2   :  { %2119 = vmatmul.msk.bf16.gmra.mxu2 %vm598_vm2, %v1038_v19  ;;  %v2998_v19 = vpop.f32.mrf.mxu1 }
 0x1c5   :  { %v2982_v51 = vpop.f32.mrf.mxu2 }
 0x1c8   :  { %v2984_v59 = vpop.f32.mrf.mxu3 }
 0x1c9   :  { %3307 = vst [vmem:[#allocation18_spill] sm:$0xff] %v2984_v59 }
 0x1cd   :  { %v2990_v6 = vpop.f32.mrf.mxu2  ;;  %2133 = vmatmul.msk.bf16.gmra.mxu3 %vm598_vm2, %v1042_v55 }
 0x1d0   :  { %v2993_v40 = vpop.f32.mrf.mxu3 }
 0x1d1   :  { %3308 = vst [vmem:[#allocation19_spill] sm:$0xff] %v2993_v40  ;;  %v1044_v40 = vsel %vm1027_vm4, %v1041_v34, %v1043_v38  ;;  %v2259_v34 = vld [vmem:[%s3291_s6 + $0x20] sm:$0xff] }
 0x1d2   :  { %2120 = vmatmul.msk.bf16.gmra.mxu2 %vm598_vm2, %v1040_v44  ;;  %v2261_v44 = vld [vmem:[%s3291_s6 + $0x30] sm:$0xff] }
 0x1d3   :  { %1590 = vmatpush.bf16.msra.mxu0 %v2261_v44 }
 0x1d5   :  { %v2996_v7 = vpop.f32.mrf.mxu2 }
 0x1d6   :  { %3309 = vst [vmem:[#allocation20_spill] sm:$0xff] %v2996_v7 }
 0x1d7   :  { %1591 = vmatpush.bf16.msra.mxu0 %v2260_v60 }
 0x1d8   :  { %v3003_v48 = vpop.f32.mrf.mxu3 }
 0x1d9   :  { %3310 = vst [vmem:[#allocation21_spill] sm:$0xff] %v3003_v48  ;;  %v3022_v48 = vpop.f32.mrf.mxu1 }
 0x1db   :  { %1592 = vmatpush.bf16.msra.mxu0 %v2259_v34  ;;  %v653_v34 = vpop.f32.mrf.mxu0 }
 0x1dd   :  { %v3013_v59 = vpop.f32.mrf.mxu2  ;;  %2134 = vmatmul.msk.bf16.gmra.mxu3 %vm598_vm2, %v1044_v40 }
 0x1de   :  { %3311 = vst [vmem:[#allocation22_spill] sm:$0xff] %v3013_v59  ;;  %v1047_v59 = vrot.slane %v2604_v41, 1  ;;  %v959_v41 = vadd.f32 %v2946_v16, %v2842_v14  ;;  %v887_v16 = vadd.f32 %v2769_v36, %v653_v34 }
 0x1df   :  { %1593 = vmatpush.bf16.msra.mxu0 %v2258_v42  ;;  %v1346_v42 = vld [vmem:[%s3289_s4] sm:$0x3] }
 0x1e0   :  { %v3024_v32 = vpop.f32.mrf.mxu3  ;;  %v3061_v1 = vperm.slane %v1346_v42, 1 }
 0x1e1   :  { %3312 = vst [vmem:[#allocation23_spill] sm:$0xff] %v3024_v32  ;;  %v3038_v60 = vpop.f32.mrf.mxu1  ;;  %v1046_v32 = vsel %vm1027_vm4, %v1043_v38, %v1045_v15  ;;  %v2255_v38 = vld [vmem:[%s3291_s6] sm:$0xff] }
 0x1e2   :  { %2121 = vmatmul.msk.bf16.gmra.mxu2 %vm598_vm2, %v1042_v55  ;;  %v2257_v55 = vld [vmem:[%s3291_s6 + $0x10] sm:$0xff] }
 0x1e3   :  { %1594 = vmatpush.bf16.msra.mxu0 %v2257_v55  ;;  %v954_v55 = vadd.f32 %v2925_v62, %v2799_v56  ;;  %v656_v29 = vpop.f32.mrf.mxu0  ;;  %v1048_v62 = vsel %vm1027_vm4, %v1045_v15, %v1047_v59 }
 0x1e5   :  { %v3030_v44 = vpop.f32.mrf.mxu2 }
 0x1e6   :  { %3313 = vst [vmem:[#allocation24_spill] sm:$0xff] %v3030_v44 }
 0x1e8   :  { %v3035_v10 = vpop.f32.mrf.mxu3 }
 0x1e9   :  { %3314 = vst [vmem:[#allocation25_spill] sm:$0xff] %v3035_v10  ;;  %v2256_v10 = vld [vmem:[%s3291_s6 + $0x8] sm:$0xff] }
 0x1ea   :  { %1595 = vmatpush.bf16.msra.mxu0 %v2256_v10 }
 0x1eb   :  { %v658_v13 = vpop.f32.mrf.mxu0 }
 0x1ed   :  { %v3044_v44 = vpop.f32.mrf.mxu2  ;;  %2135 = vmatmul.msk.bf16.gmra.mxu3 %vm598_vm2, %v1046_v32 }
 0x1ee   :  { %3315 = vst [vmem:[#allocation26_spill] sm:$0xff] %v3044_v44  ;;  %v3059_v44 = vpop.f32.mrf.mxu1  ;;  %1596 = vmatpush.bf16.msra.mxu0 %v2255_v38 }
 0x1f0   :  { %v1238_v27 = vpop.f32.mrf.mxu3 }
 0x1f1   :  { %v1299_v43 = vadd.f32 %v1238_v27, %v954_v55 }
 0x1f2   :  { %2122 = vmatmul.msk.bf16.gmra.mxu2 %vm598_vm2, %v1044_v40 }
 0x1f3   :  { %v1353_v7 = vadd.f32 %v3061_v1, %v1299_v43 }
 0x1f5   :  { %v3063_v10 = vpop.f32.mrf.mxu2  ;;  %v1401_v38 = vmax.f32 %v1353_v7, 0.0  ;;  %v961_v7 = vadd.f32 %v2959_v25, %v2860_v26 }
 0x1f6   :  { %3316 = vst [vmem:[#allocation27_spill] sm:$0xff] %v3063_v10  ;;  %v3074_v10 = vpop.f32.mrf.mxu1 }
 0x1f8   :  { %v1240_v40 = vpop.f32.mrf.mxu3 }
 0x1f9   :  { %v1301_v18 = vadd.f32 %v1240_v40, %v956_v54 }
 0x1fb   :  { %v1355_v56 = vadd.f32 %v3061_v1, %v1301_v18  ;;  %v885_v18 = vadd.f32 %v2750_v24, %v651_v35 }
 0x1fd   :  { %v1403_v27 = vmax.f32 %v1355_v56, 0.0  ;;  %v3071_v55 = vpop.f32.mrf.mxu2  ;;  %2136 = vmatmul.msk.bf16.gmra.mxu3 %vm598_vm2, %v1048_v62  ;;  %v1049_v56 = vrot.slane %v2649_v30, 1 }
 0x1fe   :  { %3317 = vst [vmem:[#allocation28_spill] sm:$0xff] %v3071_v55  ;;  %v3083_v43 = vpop.f32.mrf.mxu1  ;;  %v661_v55 = vpop.f32.mrf.mxu0 }
 0x1ff   :  { %v1449_v3 = vpack.c.bf16 %v1403_v27, %v1401_v38  ;;  %v1050_v26 = vsel %vm1027_vm4, %v1047_v59, %v1049_v56  ;;  %v964_v59 = vadd.f32 %v2966_v22, %v2876_v37  ;;  %v892_v37 = vadd.f32 %v2808_v58, %v658_v13 }
 0x200   :  { %v1243_v8 = vpop.f32.mrf.mxu3 }
 0x201   :  { %2179 = vmatmul.msk.bf16.vlgmr.msra.gmra.mxu1 %vm1552_vm5, %v1449_v3  ;;  %v1303_v54 = vadd.f32 %v1243_v8, %v959_v41 }
 0x202   :  { %2123 = vmatmul.msk.bf16.gmra.mxu2 %vm598_vm2, %v1046_v32  ;;  %v3087_v32 = vperm.slane %v1346_v42, 0 }
 0x203   :  { %v1357_v38 = vadd.f32 %v3061_v1, %v1303_v54 }
 0x205   :  { %v1169_v15 = vpop.f32.mrf.mxu2  ;;  %v1405_v25 = vmax.f32 %v1357_v38, 0.0 }
 0x206   :  { %v1298_v3 = vadd.f32 %v1169_v15, %v885_v18  ;;  %v3096_v15 = vpop.f32.mrf.mxu1  ;;  %v663_v18 = vpop.f32.mrf.mxu0 }
 0x208   :  { %v1245_v40 = vpop.f32.mrf.mxu3  ;;  %v1352_v30 = vadd.f32 %v3087_v32, %v1298_v3  ;;  %v1051_v3 = vrot.slane %v2685_v2, 1 }
 0x209   :  { %v1305_v27 = vadd.f32 %v1245_v40, %v961_v7 }
 0x20a   :  { %v1400_v7 = vmax.f32 %v1352_v30, 0.0  ;;  %v1052_v30 = vsel %vm1027_vm4, %v1049_v56, %v1051_v3  ;;  %v969_v56 = vadd.f32 %v2987_v11, %v2896_v49  ;;  %v897_v49 = vadd.f32 %v2850_v21, %v663_v18 }
 0x20b   :  { %v1359_v14 = vadd.f32 %v3061_v1, %v1305_v27  ;;  %v966_v27 = vadd.f32 %v2979_v52, %v2887_v47  ;;  %v974_v21 = vadd.f32 %v3022_v48, %v2912_v28 }
 0x20d   :  { %v1407_v24 = vmax.f32 %v1359_v14, 0.0  ;;  %v1171_v35 = vpop.f32.mrf.mxu2  ;;  %2137 = vmatmul.msk.bf16.gmra.mxu3 %vm598_vm2, %v1050_v26  ;;  %v890_v14 = vadd.f32 %v2787_v46, %v656_v29 }
 0x20e   :  { %v1300_v8 = vadd.f32 %v1171_v35, %v887_v16  ;;  %v3108_v22 = vpop.f32.mrf.mxu1  ;;  %v666_v29 = vpop.f32.mrf.mxu0 }
 0x20f   :  { %v1451_v41 = vpack.c.bf16 %v1407_v24, %v1405_v25 }
 0x210   :  { %v1354_v54 = vadd.f32 %v3087_v32, %v1300_v8  ;;  %v1248_v42 = vpop.f32.mrf.mxu3 }
 0x211   :  { %2180 = vmatmul.msk.bf16.gmra.mxu1 %vm1552_vm5, %v1451_v41  ;;  %v1307_v40 = vadd.f32 %v1248_v42, %v964_v59 }
 0x212   :  { %v1402_v36 = vmax.f32 %v1354_v54, 0.0  ;;  %2124 = vmatmul.msk.bf16.gmra.mxu2 %vm598_vm2, %v1048_v62 }
 0x213   :  { %v1361_v25 = vadd.f32 %v3061_v1, %v1307_v40  ;;  %v971_v40 = vadd.f32 %v2998_v19, %v2906_v53 }
 0x214   :  { %v1448_v34 = vpack.c.bf16 %v1402_v36, %v1400_v7 }
 0x215   :  { %v1174_v38 = vpop.f32.mrf.mxu2  ;;  %v1409_v8 = vmax.f32 %v1361_v25, 0.0 }
 0x216   :  { %1597 = vmatmul.bf16.vlgmr.msra.gmra.mxu0 %v1448_v34  ;;  %v1302_v62 = vadd.f32 %v1174_v38, %v890_v14  ;;  %v3118_v34 = vpop.f32.mrf.mxu1  ;;  %v895_v38 = vadd.f32 %v2830_v9, %v661_v55  ;;  %v668_v3 = vpop.f32.mrf.mxu0 }
 0x217   :  { %v902_v48 = vadd.f32 %v2880_v39, %v668_v3 }
 0x218   :  { %v1250_v16 = vpop.f32.mrf.mxu3  ;;  %v1356_v2 = vadd.f32 %v3087_v32, %v1302_v62 }
 0x219   :  { %v1309_v24 = vadd.f32 %v1250_v16, %v966_v27 }
 0x21a   :  { %v1404_v58 = vmax.f32 %v1356_v2, 0.0 }
 0x21b   :  { %v1363_v35 = vadd.f32 %v3061_v1, %v1309_v24 }
 0x21d   :  { %v1411_v41 = vmax.f32 %v1363_v35, 0.0  ;;  %v1176_v47 = vpop.f32.mrf.mxu2  ;;  %2138 = vmatmul.msk.bf16.gmra.mxu3 %vm598_vm2, %v1052_v30 }
 0x21e   :  { %v1304_v46 = vadd.f32 %v1176_v47, %v892_v37  ;;  %v3127_v53 = vpop.f32.mrf.mxu1  ;;  %v671_v47 = vpop.f32.mrf.mxu0 }
 0x21f   :  { %v1453_v52 = vpack.c.bf16 %v1411_v41, %v1409_v8 }
 0x220   :  { %v1358_v54 = vadd.f32 %v3087_v32, %v1304_v46  ;;  %v1253_v42 = vpop.f32.mrf.mxu3 }
 0x221   :  { %2181 = vmatmul.msk.bf16.gmra.mxu1 %vm1552_vm5, %v1453_v52  ;;  %v1311_v36 = vadd.f32 %v1253_v42, %v969_v56  ;;  %v976_v52 = vadd.f32 %v3038_v60, %v2922_v61 }
 0x222   :  { %v1406_v13 = vmax.f32 %v1358_v54, 0.0  ;;  %2125 = vmatmul.msk.bf16.gmra.mxu2 %vm598_vm2, %v1050_v26  ;;  %v900_v54 = vadd.f32 %v2872_v33, %v666_v29 }
 0x223   :  { %v1365_v14 = vadd.f32 %v3061_v1, %v1311_v36 }
 0x224   :  { %v1450_v7 = vpack.c.bf16 %v1406_v13, %v1404_v58 }
 0x225   :  { %v1179_v59 = vpop.f32.mrf.mxu2  ;;  %v1413_v11 = vmax.f32 %v1365_v14, 0.0 }
 0x226   :  { %1602 = vmatmul.bf16.gmra.mxu0 %v1450_v7  ;;  %v1306_v26 = vadd.f32 %v1179_v59, %v895_v38  ;;  %v3138_v56 = vpop.f32.mrf.mxu1  ;;  %v673_v28 = vpop.f32.mrf.mxu0 }
 0x228   :  { %v1255_v27 = vpop.f32.mrf.mxu3  ;;  %v1360_v35 = vadd.f32 %v3087_v32, %v1306_v26 }
 0x229   :  { %v1313_v16 = vadd.f32 %v1255_v27, %v971_v40 }
 0x22a   :  { %v1408_v55 = vmax.f32 %v1360_v35, 0.0 }
 0x22b   :  { %v1367_v25 = vadd.f32 %v3061_v1, %v1313_v16  ;;  %v979_v16 = vadd.f32 %v3059_v44, %v2930_v4  ;;  %v907_v4 = vadd.f32 %v2898_v50, %v673_v28  ;;  %v984_v50 = vadd.f32 %v3083_v43, %v2948_v17 }
 0x22d   :  { %v1415_v24 = vmax.f32 %v1367_v25, 0.0  ;;  %v1181_v62 = vpop.f32.mrf.mxu2 }
 0x22e   :  { %v1308_v37 = vadd.f32 %v1181_v62, %v897_v49  ;;  %v3147_v26 = vpop.f32.mrf.mxu1  ;;  %v676_v49 = vpop.f32.mrf.mxu0 }
 0x22f   :  { %v1455_v8 = vpack.c.bf16 %v1415_v24, %v1413_v11  ;;  %v981_v11 = vadd.f32 %v3074_v10, %v2940_v12  ;;  %v905_v24 = vadd.f32 %v2890_v0, %v671_v47 }
 0x230   :  { %v1362_v9 = vadd.f32 %v3087_v32, %v1308_v37  ;;  %v1258_v19 = vpop.f32.mrf.mxu3 }
 0x231   :  { %2182 = vmatmul.msk.bf16.gmra.mxu1 %vm1552_vm5, %v1455_v8  ;;  %v1315_v2 = vadd.f32 %v1258_v19, %v974_v21 }
 0x232   :  { %v1410_v41 = vmax.f32 %v1362_v9, 0.0  ;;  %2126 = vmatmul.msk.bf16.gmra.mxu2 %vm598_vm2, %v1052_v30 }
 0x233   :  { %v1369_v58 = vadd.f32 %v3061_v1, %v1315_v2 }
 0x234   :  { %v1452_v18 = vpack.c.bf16 %v1410_v41, %v1408_v55 }
 0x235   :  { %v1184_v46 = vpop.f32.mrf.mxu2  ;;  %v1417_v36 = vmax.f32 %v1369_v58, 0.0  ;;  %v986_v58 = vadd.f32 %v3096_v15, %v2956_v23 }
 0x236   :  { %1607 = vmatmul.bf16.gmra.mxu0 %v1452_v18  ;;  %v1310_v30 = vadd.f32 %v1184_v46, %v900_v54  ;;  %v3155_v41 = vpop.f32.mrf.mxu1  ;;  %v678_v47 = vpop.f32.mrf.mxu0 }
 0x237   :  { %v912_v17 = vadd.f32 %v2916_v20, %v678_v47 }
 0x238   :  { %v1260_v42 = vpop.f32.mrf.mxu3  ;;  %v1364_v38 = vadd.f32 %v3087_v32, %v1310_v30 }
 0x239   :  { %v1317_v13 = vadd.f32 %v1260_v42, %v976_v52 }
 0x23a   :  { %v1412_v27 = vmax.f32 %v1364_v38, 0.0 }
 0x23b   :  { %v1371_v7 = vadd.f32 %v3061_v1, %v1317_v13  ;;  %v910_v13 = vadd.f32 %v2909_v57, %v676_v49  ;;  %v991_v49 = vadd.f32 %v3118_v34, %v2974_v45 }
 0x23d   :  { %v1419_v59 = vmax.f32 %v1371_v7, 0.0  ;;  %v1186_v40 = vpop.f32.mrf.mxu2 }
 0x23e   :  { %v1312_v61 = vadd.f32 %v1186_v40, %v902_v48  ;;  %v3165_v30 = vpop.f32.mrf.mxu1 }
 0x23f   :  { %v1457_v60 = vpack.c.bf16 %v1419_v59, %v1417_v36  ;;  %v681_v59 = vpop.f32.mrf.mxu0 }
 0x240   :  { %v1366_v33 = vadd.f32 %v3087_v32, %v1312_v61  ;;  %v1263_v29 = vpop.f32.mrf.mxu3 }
 0x241   :  { %2183 = vmatmul.msk.bf16.gmra.mxu1 %vm1552_vm5, %v1457_v60  ;;  %v1319_v3 = vadd.f32 %v1263_v29, %v979_v16  ;;  %v989_v16 = vadd.f32 %v3108_v22, %v2964_v31 }
 0x242   :  { %v1414_v14 = vmax.f32 %v1366_v33, 0.0 }
 0x243   :  { %v1373_v35 = vadd.f32 %v3061_v1, %v1319_v3 }
 0x244   :  { %v1454_v39 = vpack.c.bf16 %v1414_v14, %v1412_v27 }
 0x245   :  { %v1189_v25 = vpop.f32.mrf.mxu2  ;;  %v1421_v44 = vmax.f32 %v1373_v35, 0.0 }
 0x246   :  { %1612 = vmatmul.bf16.gmra.mxu0 %v1454_v39  ;;  %v1314_v8 = vadd.f32 %v1189_v25, %v905_v24  ;;  %v3173_v29 = vpop.f32.mrf.mxu1 }
 0x247   :  { %v683_v39 = vpop.f32.mrf.mxu0 }
 0x248   :  { %v1265_v62 = vpop.f32.mrf.mxu3  ;;  %v1368_v21 = vadd.f32 %v3087_v32, %v1314_v8 }
 0x249   :  { %v1321_v37 = vadd.f32 %v1265_v62, %v981_v11  ;;  %v915_v11 = vadd.f32 %v2927_v63, %v681_v59 }
 0x24a   :  { %v1416_v2 = vmax.f32 %v1368_v21, 0.0 }
 0x24b   :  { %v1375_v9 = vadd.f32 %v3061_v1, %v1321_v37 }
 0x24d   :  { %v1423_v19 = vmax.f32 %v1375_v9, 0.0  ;;  %v1191_v55 = vpop.f32.mrf.mxu2  ;;  %v917_v9 = vadd.f32 %v2932_v5, %v683_v39  ;;  %v994_v5 = vadd.f32 %v3127_v53, %v2982_v51  ;;  %v3319_v51 = vld [vmem:[#allocation14_spill] sm:$0xff]  ;;  %v3322_v39 = vld [vmem:[#allocation5_spill] sm:$0xff] }
 0x24e   :  { %v1316_v18 = vadd.f32 %v1191_v55, %v907_v4  ;;  %v3183_v31 = vpop.f32.mrf.mxu1 }
 0x24f   :  { %v1459_v12 = vpack.c.bf16 %v1423_v19, %v1421_v44  ;;  %v686_v45 = vpop.f32.mrf.mxu0 }
 0x250   :  { %v1370_v0 = vadd.f32 %v3087_v32, %v1316_v18  ;;  %v1268_v10 = vpop.f32.mrf.mxu3 }
 0x251   :  { %2184 = vmatmul.msk.bf16.gmra.mxu1 %vm1552_vm5, %v1459_v12  ;;  %v1323_v54 = vadd.f32 %v1268_v10, %v984_v50  ;;  %v3318_v50 = vld [vmem:[#allocation13_spill] sm:$0xff] }
 0x252   :  { %v1418_v46 = vmax.f32 %v1370_v0, 0.0 }
 0x253   :  { %v1377_v48 = vadd.f32 %v3061_v1, %v1323_v54 }
 0x254   :  { %v1456_v52 = vpack.c.bf16 %v1418_v46, %v1416_v2  ;;  %v996_v46 = vadd.f32 %v3138_v56, %v2990_v6 }
 0x255   :  { %v1194_v42 = vpop.f32.mrf.mxu2  ;;  %v1425_v43 = vmax.f32 %v1377_v48, 0.0 }
 0x256   :  { %1617 = vmatmul.bf16.gmra.mxu0 %v1456_v52  ;;  %v1318_v36 = vadd.f32 %v1194_v42, %v910_v13  ;;  %v3190_v2 = vpop.f32.mrf.mxu1  ;;  %v920_v52 = vadd.f32 %v3318_v50, %v686_v45 }
 0x257   :  { %v688_v42 = vpop.f32.mrf.mxu0 }
 0x258   :  { %v1270_v7 = vpop.f32.mrf.mxu3  ;;  %v1372_v60 = vadd.f32 %v3087_v32, %v1318_v36  ;;  %v922_v53 = vadd.f32 %v3319_v51, %v688_v42  ;;  %v3328_v42 = vld [vmem:[#allocation7_spill] sm:$0xff] }
 0x259   :  { %v1325_v28 = vadd.f32 %v1270_v7, %v986_v58 }
 0x25a   :  { %v1420_v27 = vmax.f32 %v1372_v60, 0.0 }
 0x25b   :  { %v1379_v40 = vadd.f32 %v3061_v1, %v1325_v28 }
 0x25d   :  { %v1427_v38 = vmax.f32 %v1379_v40, 0.0  ;;  %v1196_v61 = vpop.f32.mrf.mxu2 }
 0x25e   :  { %v1320_v23 = vadd.f32 %v1196_v61, %v912_v17 }
 0x25f   :  { %v1461_v15 = vpack.c.bf16 %v1427_v38, %v1425_v43 }
 0x260   :  { %v1374_v57 = vadd.f32 %v3087_v32, %v1320_v23  ;;  %v1273_v33 = vpop.f32.mrf.mxu3  ;;  %v3320_v23 = vld [vmem:[#allocation20_spill] sm:$0xff] }
 0x261   :  { %2185 = vmatmul.msk.bf16.gmra.mxu1 %vm1552_vm5, %v1461_v15  ;;  %v1327_v3 = vadd.f32 %v1273_v33, %v989_v16  ;;  %v999_v15 = vadd.f32 %v3147_v26, %v3320_v23  ;;  %v3321_v16 = vld [vmem:[#allocation22_spill] sm:$0xff]  ;;  %v3325_v26 = vld [vmem:[#allocation16_spill] sm:$0xff] }
 0x262   :  { %v1422_v14 = vmax.f32 %v1374_v57, 0.0 }
 0x263   :  { %v1381_v62 = vadd.f32 %v3061_v1, %v1327_v3  ;;  %v3323_v3 = vld [vmem:[#allocation15_spill] sm:$0xff] }
 0x264   :  { %v1458_v20 = vpack.c.bf16 %v1422_v14, %v1420_v27 }
 0x265   :  { %v1199_v25 = vpop.f32.mrf.mxu2  ;;  %v1429_v22 = vmax.f32 %v1381_v62, 0.0 }
 0x266   :  { %1622 = vmatmul.bf16.gmra.mxu0 %v1458_v20  ;;  %v1322_v37 = vadd.f32 %v1199_v25, %v915_v11  ;;  %v1001_v20 = vadd.f32 %v3155_v41, %v3321_v16  ;;  %v925_v25 = vadd.f32 %v3323_v3, %v3322_v39 }
 0x268   :  { %v1275_v24 = vpop.f32.mrf.mxu3  ;;  %v1376_v19 = vadd.f32 %v3087_v32, %v1322_v37  ;;  %v3324_v37 = vld [vmem:[#allocation6_spill] sm:$0xff] }
 0x269   :  { %v1329_v35 = vadd.f32 %v1275_v24, %v991_v49 }
 0x26a   :  { %v1424_v18 = vmax.f32 %v1376_v19, 0.0 }
 0x26b   :  { %v1383_v8 = vadd.f32 %v3061_v1, %v1329_v35 }
 0x26d   :  { %v1431_v4 = vmax.f32 %v1383_v8, 0.0  ;;  %v1201_v44 = vpop.f32.mrf.mxu2  ;;  %v927_v8 = vadd.f32 %v3325_v26, %v3324_v37  ;;  %v3335_v37 = vld [vmem:[#allocation19_spill] sm:$0xff] }
 0x26e   :  { %v1324_v55 = vadd.f32 %v1201_v44, %v917_v9 }
 0x26f   :  { %v1463_v34 = vpack.c.bf16 %v1431_v4, %v1429_v22 }
 0x270   :  { %v1378_v63 = vadd.f32 %v3087_v32, %v1324_v55  ;;  %v1278_v21 = vpop.f32.mrf.mxu3 }
 0x271   :  { %2186 = vmatmul.msk.bf16.gmra.mxu1 %vm1552_vm5, %v1463_v34  ;;  %v1331_v10 = vadd.f32 %v1278_v21, %v994_v5 }
 0x272   :  { %v1426_v12 = vmax.f32 %v1378_v63, 0.0 }
 0x273   :  { %v1385_v58 = vadd.f32 %v3061_v1, %v1331_v10 }
 0x274   :  { %v1460_v0 = vpack.c.bf16 %v1426_v12, %v1424_v18  ;;  %v3326_v18 = vld [vmem:[#allocation24_spill] sm:$0xff] }
 0x275   :  { %v1204_v47 = vpop.f32.mrf.mxu2  ;;  %v1433_v28 = vmax.f32 %v1385_v58, 0.0  ;;  %v1004_v12 = vadd.f32 %v3165_v30, %v3326_v18  ;;  %v3329_v58 = vld [vmem:[#allocation17_spill] sm:$0xff] }
 0x276   :  { %1627 = vmatmul.bf16.gmra.mxu0 %v1460_v0  ;;  %v1326_v7 = vadd.f32 %v1204_v47, %v920_v52  ;;  %v3327_v52 = vld [vmem:[#allocation26_spill] sm:$0xff] }
 0x278   :  { %v1280_v54 = vpop.f32.mrf.mxu3  ;;  %v1380_v40 = vadd.f32 %v3087_v32, %v1326_v7 }
 0x279   :  { %v1333_v13 = vadd.f32 %v1280_v54, %v996_v46  ;;  %v1006_v54 = vadd.f32 %v3173_v29, %v3327_v52 }
 0x27a   :  { %v1428_v61 = vmax.f32 %v1380_v40, 0.0 }
 0x27b   :  { %v1387_v48 = vadd.f32 %v3061_v1, %v1333_v13  ;;  %v930_v13 = vadd.f32 %v3329_v58, %v3328_v42 }
 0x27d   :  { %v1435_v36 = vmax.f32 %v1387_v48, 0.0  ;;  %v1206_v59 = vpop.f32.mrf.mxu2 }
 0x27e   :  { %v1328_v17 = vadd.f32 %v1206_v59, %v922_v53  ;;  %v1667_v43 = vpop.f32.mrf.mxu1  ;;  %v3331_v59 = vld [vmem:[#allocation18_spill] sm:$0xff] }
 0x27f   :  { %v1465_v6 = vpack.c.bf16 %v1435_v36, %v1433_v28  ;;  %v3330_v36 = vld [vmem:[#allocation8_spill] sm:$0xff] }
 0x280   :  { %v1382_v56 = vadd.f32 %v3087_v32, %v1328_v17  ;;  %v1283_v38 = vpop.f32.mrf.mxu3  ;;  %v932_v40 = vadd.f32 %v3331_v59, %v3330_v36 }
 0x281   :  { %2187 = vmatmul.msk.bf16.gmra.mxu1 %vm1552_vm5, %v1465_v6  ;;  %v1335_v33 = vadd.f32 %v1283_v38, %v999_v15 }
 0x282   :  { %v1430_v60 = vmax.f32 %v1382_v56, 0.0 }
 0x283   :  { %v1389_v11 = vadd.f32 %v3061_v1, %v1335_v33 }
 0x284   :  { %v1462_v57 = vpack.c.bf16 %v1430_v60, %v1428_v61 }
 0x285   :  { %v1209_v27 = vpop.f32.mrf.mxu2  ;;  %v1437_v9 = vmax.f32 %v1389_v11, 0.0 }
 0x286   :  { %1632 = vmatmul.bf16.gmra.mxu0 %v1462_v57  ;;  %v1669_v14 = vpop.f32.mrf.mxu1  ;;  %v1330_v62 = vadd.f32 %v1209_v27, %v925_v25 }
 0x288   :  { %v1285_v49 = vpop.f32.mrf.mxu3  ;;  %v1384_v44 = vadd.f32 %v3087_v32, %v1330_v62 }
 0x289   :  { %v1337_v24 = vadd.f32 %v1285_v49, %v1001_v20 }
 0x28a   :  { %v1432_v63 = vmax.f32 %v1384_v44, 0.0 }
 0x28b   :  { %v1391_v35 = vadd.f32 %v3061_v1, %v1337_v24  ;;  %v3333_v24 = vld [vmem:[#allocation28_spill] sm:$0xff] }
 0x28c   :  { %v1011_v62 = vadd.f32 %v3190_v2, %v3333_v24 }
 0x28d   :  { %v1439_v22 = vmax.f32 %v1391_v35, 0.0  ;;  %v1211_v4 = vpop.f32.mrf.mxu2  ;;  %v3334_v35 = vld [vmem:[#allocation9_spill] sm:$0xff] }
 0x28e   :  { %v1332_v19 = vadd.f32 %v1211_v4, %v927_v8  ;;  %v1672_v41 = vpop.f32.mrf.mxu1  ;;  %v935_v26 = vadd.f32 %v3335_v37, %v3334_v35 }
 0x28f   :  { %v1467_v55 = vpack.c.bf16 %v1439_v22, %v1437_v9 }
 0x290   :  { %v1386_v45 = vadd.f32 %v3087_v32, %v1332_v19  ;;  %v1288_v34 = vpop.f32.mrf.mxu3  ;;  %v3336_v19 = vld [vmem:[#allocation10_spill] sm:$0xff] }
 0x291   :  { %2188 = vmatmul.msk.bf16.gmra.mxu1 %vm1552_vm5, %v1467_v55  ;;  %v1339_v47 = vadd.f32 %v1288_v34, %v1004_v12 }
 0x292   :  { %v1434_v21 = vmax.f32 %v1386_v45, 0.0 }
 0x293   :  { %v1598_v5 = vpop.f32.mrf.mxu0  ;;  %v1393_v48 = vadd.f32 %v3061_v1, %v1339_v47 }
 0x294   :  { %v3216_v0 = vadd.f32 %v1667_v43, %v1598_v5  ;;  %v1464_v10 = vpack.c.bf16 %v1434_v21, %v1432_v63 }
 0x295   :  { %v1214_v46 = vpop.f32.mrf.mxu2  ;;  %v1441_v43 = vmax.f32 %v1393_v48, 0.0 }
 0x296   :  { %1637 = vmatmul.bf16.gmra.mxu0 %v1464_v10  ;;  %v1674_v50 = vpop.f32.mrf.mxu1  ;;  %v1334_v53 = vadd.f32 %v1214_v46, %v930_v13  ;;  %v3338_v13 = vld [vmem:[#allocation11_spill] sm:$0xff] }
 0x298   :  { %v1290_v7 = vpop.f32.mrf.mxu3  ;;  %v1388_v29 = vadd.f32 %v3087_v32, %v1334_v53 }
 0x299   :  { %v1341_v51 = vadd.f32 %v1290_v7, %v1006_v54  ;;  %v3339_v7 = vld [vmem:[#allocation23_spill] sm:$0xff] }
 0x29a   :  { %v1436_v33 = vmax.f32 %v1388_v29, 0.0  ;;  %v940_v48 = vadd.f32 %v3339_v7, %v3338_v13 }
 0x29b   :  { %v1395_v30 = vadd.f32 %v3061_v1, %v1341_v51  ;;  %v1600_v28 = vpop.f32.mrf.mxu0 }
 0x29c   :  { %v3226_v17 = vadd.f32 %v1669_v14, %v1600_v28  ;;  %v3332_v14 = vld [vmem:[#allocation27_spill] sm:$0xff]  ;;  %v3341_v28 = vld [vmem:[#allocation25_spill] sm:$0xff] }
 0x29d   :  { %v1443_v6 = vmax.f32 %v1395_v30, 0.0  ;;  %v1216_v56 = vpop.f32.mrf.mxu2  ;;  %v1009_v16 = vadd.f32 %v3183_v31, %v3332_v14  ;;  %v3340_v30 = vld [vmem:[#allocation12_spill] sm:$0xff] }
 0x29e   :  { %v1729_v38 = vpack.c.bf16 %v3226_v17, %v3216_v0  ;;  %v1336_v61 = vadd.f32 %v1216_v56, %v932_v40  ;;  %v1677_v60 = vpop.f32.mrf.mxu1  ;;  %v942_v36 = vadd.f32 %v3341_v28, %v3340_v30 }
 0x29f   :  { %v1469_v23 = vpack.c.bf16 %v1443_v6, %v1441_v43 }
 0x2a0   :  { %v1390_v15 = vadd.f32 %v3087_v32, %v1336_v61  ;;  %v1293_v57 = vpop.f32.mrf.mxu3 }
 0x2a1   :  { %2189 = vmatmul.msk.bf16.gmra.mxu1 %vm1552_vm5, %v1469_v23  ;;  %v1343_v25 = vadd.f32 %v1293_v57, %v1009_v16 }
 0x2a2   :  { %v1438_v27 = vmax.f32 %v1390_v15, 0.0 }
 0x2a3   :  { %v1603_v20 = vpop.f32.mrf.mxu0  ;;  %v1397_v9 = vadd.f32 %v3061_v1, %v1343_v25 }
 0x2a4   :  { %v3235_v39 = vadd.f32 %v1672_v41, %v1603_v20  ;;  %v1466_v3 = vpack.c.bf16 %v1438_v27, %v1436_v33  ;;  %v3337_v41 = vld [vmem:[#allocation21_spill] sm:$0xff] }
 0x2a5   :  { %v1219_v49 = vpop.f32.mrf.mxu2  ;;  %v937_v55 = vadd.f32 %v3337_v41, %v3336_v19  ;;  %v1445_v34 = vmax.f32 %v1397_v9, 0.0 }
 0x2a6   :  { %1642 = vmatmul.bf16.gmra.mxu0 %v1466_v3  ;;  %v1679_v11 = vpop.f32.mrf.mxu1  ;;  %v1338_v4 = vadd.f32 %v1219_v49, %v935_v26 }
 0x2a8   :  { %v1295_v8 = vpop.f32.mrf.mxu3  ;;  %v1392_v2 = vadd.f32 %v3087_v32, %v1338_v4 }
 0x2a9   :  { %v1345_v22 = vadd.f32 %v1295_v8, %v1011_v62 }
 0x2ab   :  { %v1399_v31 = vadd.f32 %v3061_v1, %v1345_v22  ;;  %v1605_v44 = vpop.f32.mrf.mxu0  ;;  %v1440_v1 = vmax.f32 %v1392_v2, 0.0 }
 0x2ac   :  { %v3245_v45 = vadd.f32 %v1674_v50, %v1605_v44 }
 0x2ad   :  { %v1447_v63 = vmax.f32 %v1399_v31, 0.0  ;;  %v1221_v21 = vpop.f32.mrf.mxu2 }
 0x2ae   :  { %v1730_v18 = vpack.c.bf16 %v3245_v45, %v3235_v39  ;;  %v1340_v12 = vadd.f32 %v1221_v21, %v937_v55  ;;  %v1682_v5 = vpop.f32.mrf.mxu1 }
 0x2af   :  { %v1471_v10 = vpack.c.bf16 %v1447_v63, %v1445_v34 }
 0x2b0   :  { %v1394_v47 = vadd.f32 %v3087_v32, %v1340_v12 }
 0x2b1   :  { %2190 = vmatmul.msk.bf16.gmra.mxu1 %vm1552_vm5, %v1471_v10 }
 0x2b2   :  { %v1442_v46 = vmax.f32 %v1394_v47, 0.0 }
 0x2b3   :  { %v1608_v52 = vpop.f32.mrf.mxu0 }
 0x2b4   :  { %v3252_v50 = vadd.f32 %v1677_v60, %v1608_v52  ;;  %v1468_v54 = vpack.c.bf16 %v1442_v46, %v1440_v1 }
 0x2b5   :  { %v1224_v42 = vpop.f32.mrf.mxu2 }
 0x2b6   :  { %1647 = vmatmul.bf16.gmra.mxu0 %v1468_v54  ;;  %v1684_v58 = vpop.f32.mrf.mxu1  ;;  %v1342_v51 = vadd.f32 %v1224_v42, %v940_v48 }
 0x2b8   :  { %v1396_v43 = vadd.f32 %v3087_v32, %v1342_v51  ;;  %v2193_v51 = vld [vmem:[%s3290_s5] sm:$0xf] }
 0x2ba   :  { %v1444_v60 = vmax.f32 %v1396_v43, 0.0 }
 0x2bb   :  { %v1610_v53 = vpop.f32.mrf.mxu0 }
 0x2bc   :  { %v1680_v59 = vadd.f32 %v1679_v11, %v1610_v53  ;;  %v2266_v53 = vld [vmem:[%s3290_s5 + $0x4] sm:$0x30] }
 0x2bd   :  { %v1226_v40 = vpop.f32.mrf.mxu2  ;;  %v2194_v30 = vor.u32 %v2266_v53, %v2193_v51 }
 0x2be   :  { %v1731_v6 = vpack.c.bf16 %v1680_v59, %v3252_v50  ;;  %v1344_v56 = vadd.f32 %v1226_v40, %v942_v36  ;;  %v1687_v29 = vpop.f32.mrf.mxu1 }
 0x2c0   :  { %v1398_v61 = vadd.f32 %v3087_v32, %v1344_v56 }
 0x2c2   :  { %v1446_v23 = vmax.f32 %v1398_v61, 0.0 }
 0x2c3   :  { %v1613_v15 = vpop.f32.mrf.mxu0 }
 0x2c4   :  { %v1683_v57 = vadd.f32 %v1682_v5, %v1613_v15  ;;  %v1470_v33 = vpack.c.bf16 %v1446_v23, %v1444_v60  ;;  %v2265_v23 = vld [vmem:[%s3290_s5 + $0x4] sm:$0xf]  ;;  %v2195_v15 = vld [vmem:[%s3290_s5 + $0x8] sm:$0x30] }
 0x2c6   :  { %1652 = vmatmul.bf16.gmra.mxu0 %v1470_v33  ;;  %v1689_v27 = vpop.f32.mrf.mxu1  ;;  %v2198_v33 = vor.u32 %v2265_v23, %v2195_v15 }
 0x2cb   :  { %v1615_v14 = vpop.f32.mrf.mxu0 }
 0x2cc   :  { %v1685_v16 = vadd.f32 %v1684_v58, %v1615_v14 }
 0x2ce   :  { %v1732_v20 = vpack.c.bf16 %v1685_v16, %v1683_v57  ;;  %v1692_v3 = vpop.f32.mrf.mxu1 }
 0x2d3   :  { %v1618_v25 = vpop.f32.mrf.mxu0 }
 0x2d4   :  { %v1688_v49 = vadd.f32 %v1687_v29, %v1618_v25 }
 0x2d6   :  { %v1694_v11 = vpop.f32.mrf.mxu1 }
 0x2db   :  { %v1620_v24 = vpop.f32.mrf.mxu0 }
 0x2dc   :  { %v1690_v1 = vadd.f32 %v1689_v27, %v1620_v24  ;;  %v2292_v27 = vld [vmem:[%s3292_s7] ss:$0 sm:$0xff]  ;;  %s2320_s7 = smov 128  }
 0x2de   :  { %v1697_v62 = vpop.f32.mrf.mxu1  ;;  %v1733_v50 = vpack.c.bf16 %v1690_v1, %v1688_v49 }
 0x2e3   :  { %v1623_v35 = vpop.f32.mrf.mxu0 }
 0x2e4   :  { %v1693_v10 = vadd.f32 %v1692_v3, %v1623_v35 }
 0x2e6   :  { %v1699_v37 = vpop.f32.mrf.mxu1 }
 0x2eb   :  { %v1625_v26 = vpop.f32.mrf.mxu0 }
 0x2ec   :  { %v1695_v2 = vadd.f32 %v1694_v11, %v1625_v26 }
 0x2ee   :  { %v1702_v32 = vpop.f32.mrf.mxu1  ;;  %v1734_v46 = vpack.c.bf16 %v1695_v2, %v1693_v10 }
 0x2f3   :  { %v1628_v8 = vpop.f32.mrf.mxu0 }
 0x2f4   :  { %v1698_v21 = vadd.f32 %v1697_v62, %v1628_v8 }
 0x2f6   :  { %v1704_v9 = vpop.f32.mrf.mxu1 }
 0x2fb   :  { %v1630_v22 = vpop.f32.mrf.mxu0 }
 0x2fc   :  { %v1700_v55 = vadd.f32 %v1699_v37, %v1630_v22 }
 0x2fe   :  { %v1707_v31 = vpop.f32.mrf.mxu1  ;;  %v1735_v12 = vpack.c.bf16 %v1700_v55, %v1698_v21 }
 0x303   :  { %v1633_v4 = vpop.f32.mrf.mxu0 }
 0x304   :  { %v1703_v19 = vadd.f32 %v1702_v32, %v1633_v4 }
 0x306   :  { %v1709_v63 = vpop.f32.mrf.mxu1 }
 0x30b   :  { %v1635_v44 = vpop.f32.mrf.mxu0 }
 0x30c   :  { %v1705_v41 = vadd.f32 %v1704_v9, %v1635_v44 }
 0x30e   :  { %v1736_v34 = vpack.c.bf16 %v1705_v41, %v1703_v19  ;;  %v1712_v52 = vpop.f32.mrf.mxu1 }
 0x310   :  { %1758 = vmatpush.bf16.msrb.mxu2 %v1736_v34 }
 0x313   :  { %v1638_v5 = vpop.f32.mrf.mxu0 }
 0x314   :  { %v1708_v47 = vadd.f32 %v1707_v31, %v1638_v5  ;;  %1759 = vmatpush.bf16.msrb.mxu2 %v1735_v12 }
 0x316   :  { %v1714_v42 = vpop.f32.mrf.mxu1 }
 0x318   :  { %1760 = vmatpush.bf16.msrb.mxu2 %v1734_v46 }
 0x31b   :  { %v1640_v54 = vpop.f32.mrf.mxu0 }
 0x31c   :  { %1761 = vmatpush.bf16.msrb.mxu2 %v1733_v50  ;;  %v1710_v61 = vadd.f32 %v1709_v63, %v1640_v54 }
 0x31e   :  { %v1717_v7 = vpop.f32.mrf.mxu1  ;;  %v1737_v57 = vpack.c.bf16 %v1710_v61, %v1708_v47 }
 0x320   :  { %1762 = vmatpush.bf16.msrb.mxu2 %v1732_v20 }
 0x323   :  { %v1643_v58 = vpop.f32.mrf.mxu0 }
 0x324   :  { %1763 = vmatpush.bf16.msrb.mxu2 %v1731_v6  ;;  %v1713_v29 = vadd.f32 %v1712_v52, %v1643_v58 }
 0x326   :  { %v1719_v28 = vpop.f32.mrf.mxu1 }
 0x328   :  { %1764 = vmatpush.bf16.msrb.mxu2 %v1730_v18 }
 0x32b   :  { %v1645_v13 = vpop.f32.mrf.mxu0 }
 0x32c   :  { %1765 = vmatpush.bf16.msrb.mxu2 %v1729_v38  ;;  %v1715_v6 = vadd.f32 %v1714_v42, %v1645_v13 }
 0x32e   :  { %v1722_v45 = vpop.f32.mrf.mxu1  ;;  %v1738_v60 = vpack.c.bf16 %v1715_v6, %v1713_v29 }
 0x32f   :  { %1766 = vmatmul.bf16.vlgmr.msrb.gmra.mxu2 %v2194_v30 }
 0x333   :  { %v1648_v48 = vpop.f32.mrf.mxu0 }
 0x334   :  { %v1718_v43 = vadd.f32 %v1717_v7, %v1648_v48 }
 0x336   :  { %v1724_v36 = vpop.f32.mrf.mxu1 }
 0x33b   :  { %v1650_v39 = vpop.f32.mrf.mxu0 }
 0x33c   :  { %v1720_v38 = vadd.f32 %v1719_v28, %v1650_v39 }
 0x33e   :  { %v1739_v56 = vpack.c.bf16 %v1720_v38, %v1718_v43 }
 0x343   :  { %v1653_v18 = vpop.f32.mrf.mxu0 }
 0x344   :  { %v1723_v0 = vadd.f32 %v1722_v45, %v1653_v18 }
 0x34b   :  { %v1655_v59 = vpop.f32.mrf.mxu0 }
 0x34c   :  { %v1725_v17 = vadd.f32 %v1724_v36, %v1655_v59 }
 0x34e   :  { %v1740_v40 = vpack.c.bf16 %v1725_v17, %v1723_v0 }
 0x350   :  { %1776 = vmatpush.bf16.msrb.mxu3 %v1740_v40 }
 0x354   :  { %1777 = vmatpush.bf16.msrb.mxu3 %v1739_v56 }
 0x358   :  { %1778 = vmatpush.bf16.msrb.mxu3 %v1738_v60 }
 0x35c   :  { %1779 = vmatpush.bf16.msrb.mxu3 %v1737_v57 }
 0x35f   :  { %2199 = vmatmul.msk.bf16.vlgmr.msrb.gmra.mxu3 %vm1754_vm6, %v2198_v33 }
 0x3b2   :  { %v1767_v14 = vpop.f32.mrf.mxu2 }
 0x3b3   :  { %v1768_v16 = vadd.f32 %v2292_v27, %v1767_v14 }
 0x3ba   :  { %v1769_v25 = vpop.f32.mrf.mxu2 }
 0x3bb   :  { %v1770_v49 = vadd.f32 %v2292_v27, %v1769_v25 }
 0x3e2   :  { %v1781_v20 = vpop.f32.mrf.mxu3 }
 0x3e3   :  { %v1782_v3 = vadd.f32 %v1781_v20, %v1768_v16 }
 0x3e5   :  { %1787 = vst.msk [vmem:[#allocation2] sm:$0xff] %vm1786_vm7, %v1782_v3 }
 0x3ea   :  { %v1783_v11 = vpop.f32.mrf.mxu3 }
 0x3eb   :  { %v1784_v24 = vadd.f32 %v1783_v11, %v1770_v49 }
 0x3ed   :  { %1789 = vst.msk [vmem:[#allocation2 + $0x8] sm:$0xf] %vm1788_vm8, %v1784_v24 }
 0x3ee   :  { %1802 = dma.vmem_to_hbm [thread:$0]  %s1795_s30, 256, %s1797_s10, [#allocation3], %s2320_s7, %s2320_s7, %s2321_s11  }
 0x3ef   :  { %2317 = dma.done.wait [#allocation3], 256  }
 0x3f0   :  { %2318 = vsyncadd [#allocation3], 4294967040 }
 0x3f1   :  { %1807 = vsyncpa [#allocation3], 1 }

</bundles_post_ra>
